<compile_context>
chip_gen: v5e
topology: v5e:2x2
jax: 0.10.0
libtpu: 0.0.40
codegen_flags: <defaults>
</compile_context>

<pallas_src>
import jax
import jax.numpy as jnp
from jax import lax
from jax.experimental import pallas as pl
from jax.experimental.pallas import tpu as pltpu


def _round_up(x, m):
    return (x + m - 1) // m * m


def lstm_kernel(x_ref, wih_ref, whh_hbm, b_ref, wc_hbm, bc_ref,     # inputs
                out_ref, fea_ref,                                   # outputs
                gates_ref, whh_vmem, wc_vmem, dma_sem):             # scratch
    """Whole LSTM + classifier in one kernel invocation.

    x_ref    : (T*Bp, I)  time-major input, batch padded to a sublane multiple
    wih_ref  : (I, 4H)    W_ih^T, gate-reordered [i,f,o,g]        (f32, VMEM)
    whh_hbm  : (H, 4H)    W_hh^T, gate-reordered                  (ANY/HBM)
    b_ref    : (1, 4H)    b_ih + b_hh, gate-reordered             (f32, VMEM)
    wc_hbm   : (H, Cp)    W_c^T, classes zero-padded to 128 lanes (ANY/HBM)
    bc_ref   : (1, Cp)    b_c, zero-padded                        (f32, VMEM)
    out_ref  : (Bp, Cp)   padded logits
    fea_ref  : (Bp, H)    h_T (the "fea" output)
    gates_ref: (T*Bp, 4H) VMEM scratch for the hoisted input projection
    whh_vmem : (H, 4H)    VMEM landing buffer for W_hh (manual DMA)
    wc_vmem  : (H, Cp)    VMEM landing buffer for W_c  (manual DMA)
    dma_sem  : DMA semaphores (2,)
    """
    Bp, H = fea_ref.shape
    TB = x_ref.shape[0]
    T = TB // Bp

    # ---- kick off the weight DMAs immediately (overlap with compute) ------
    whh_cp = pltpu.make_async_copy(whh_hbm, whh_vmem, dma_sem.at[0])
    wc_cp = pltpu.make_async_copy(wc_hbm, wc_vmem, dma_sem.at[1])
    whh_cp.start()
    wc_cp.start()

    # ---- hoisted input projection: one MXU matmul for all timesteps -------
    # Written to VMEM scratch so the (T*Bp, 4H) block is not live in vregs.
    gates_ref[...] = (
        jnp.dot(x_ref[...], wih_ref[...], preferred_element_type=jnp.float32)
        + b_ref[...])

    def gate_math(g, c):
        # Gate order (after prep-time reorder): [i, f, o, g].
        # One wide sigmoid over 3H columns (single EUP launch) + one tanh.
        # jax.nn.sigmoid lowers to the EUP logistic, keeping VALU free.
        sig = jax.nn.sigmoid(g[:, 0:3 * H])
        i_g = sig[:, 0 * H:1 * H]
        f_g = sig[:, 1 * H:2 * H]
        o_g = sig[:, 2 * H:3 * H]
        g_g = jnp.tanh(g[:, 3 * H:4 * H])
        c_new = f_g * c + i_g * g_g
        h_new = o_g * jnp.tanh(c_new)
        return h_new, c_new

    # ---- t = 0: h == c == 0, the recurrent matmul is dead -> skip it.
    # This step's EUP work also hides the in-flight W_hh DMA.
    h, c = gate_math(gates_ref[pl.ds(0, Bp), :],
                     jnp.zeros((Bp, H), jnp.float32))

    # ---- fully-unrolled recurrence (T is a small static constant) ---------
    whh_cp.wait()                       # W_hh must be in VMEM from t = 1 on
    for t in range(1, T):
        whh = whh_vmem[...]             # load at the dot site; not live across steps
        g = gates_ref[pl.ds(t * Bp, Bp), :] + jnp.dot(
            h.astype(whh.dtype), whh, preferred_element_type=jnp.float32)
        h, c = gate_math(g, c)

    fea_ref[...] = h.astype(fea_ref.dtype)

    # ---- classifier: W_c DMA has had the whole recurrence to land ---------
    wc_cp.wait()
    logits = jnp.dot(h, wc_vmem[...],
                     preferred_element_type=jnp.float32) + bc_ref[...]
    out_ref[...] = logits.astype(out_ref.dtype)


def prepare_params(params, *, whh_dtype=jnp.bfloat16):
    """One-time weight layout: transpose, gate reorder [i,f,g,o]->[i,f,o,g],
    bias sum, class padding to the 128-lane width, casts.  Do this at
    parameter-prep time, NOT per forward call."""
    H = params["w_hh"].shape[1]
    assert params["w_hh"].shape[0] == 4 * H
    n_cls = params["w_c"].shape[0]
    Cp = _round_up(n_cls, 128)

    def reorder(w_t):   # last axis is 4H with PyTorch order i,f,g,o
        return jnp.concatenate(
            [w_t[..., 0:2 * H], w_t[..., 3 * H:4 * H], w_t[..., 2 * H:3 * H]],
            axis=-1)

    wih_t = reorder(params["w_ih"].T.astype(jnp.float32))                  # (I, 4H)
    whh_t = reorder(params["w_hh"].T.astype(jnp.float32)).astype(whh_dtype)  # (H, 4H)
    bias = reorder((params["b_ih"] + params["b_hh"])
                   .reshape(1, 4 * H).astype(jnp.float32))                 # (1, 4H)
    wc_t = jnp.zeros((H, Cp), jnp.float32).at[:, :n_cls].set(
        params["w_c"].T.astype(jnp.float32))                               # (H, Cp)
    bc = jnp.zeros((1, Cp), jnp.float32).at[:, :n_cls].set(
        params["b_c"].astype(jnp.float32))                                 # (1, Cp)
    return {"wih_t": wih_t, "whh_t": whh_t, "bias": bias,
            "wc_t": wc_t, "bc": bc, "n_classes": int(n_cls)}


def lstm_forward(x, prep):
    """x: (B, T, I) float32, batch_first like the PyTorch module.
    `prep` comes from prepare_params (bf16 recurrent weights by default)."""
    B, T, I = x.shape
    H, H4 = prep["whh_t"].shape
    Cp = prep["wc_t"].shape[1]
    n_cls = prep["n_classes"]

    Bp = _round_up(B, 8)            # f32 sublane granularity

    # Single tiny pre-kernel fusion: batch-pad + time-major + flatten.
    x_p = jnp.pad(x.astype(jnp.float32), ((0, Bp - B), (0, 0), (0, 0)))
    x_tm = jnp.transpose(x_p, (1, 0, 2)).reshape(T * Bp, I)               # (T*Bp, I)

    full = lambda shp: pl.BlockSpec(shp, lambda i: (0, 0))

    out_p, fea_p = pl.pallas_call(
        lstm_kernel,
        grid=(1,),
        in_specs=[
            full((T * Bp, I)),                   # x (time-major, padded)
            full((I, H4)),                       # W_ih^T
            pl.BlockSpec(memory_space=pl.ANY),   # W_hh^T  — manual DMA overlap
            full((1, H4)),                       # bias
            pl.BlockSpec(memory_space=pl.ANY),   # W_c^T   — manual DMA overlap
            full((1, Cp)),                       # b_c
        ],
        out_specs=(full((Bp, Cp)), full((Bp, H))),
        out_shape=(jax.ShapeDtypeStruct((Bp, Cp), jnp.float32),
                   jax.ShapeDtypeStruct((Bp, H), jnp.float32)),
        scratch_shapes=[
            pltpu.VMEM((T * Bp, H4), jnp.float32),      # hoisted projection
            pltpu.VMEM((H, H4), prep["whh_t"].dtype),   # W_hh landing buffer
            pltpu.VMEM((H, Cp), prep["wc_t"].dtype),    # W_c  landing buffer
            pltpu.SemaphoreType.DMA((2,)),
        ],
        compiler_params=pltpu.CompilerParams(
            dimension_semantics=("arbitrary",)),
    )(x_tm, prep["wih_t"], prep["whh_t"], prep["bias"],
      prep["wc_t"], prep["bc"])

    # Slice away the batch / class padding.
    return out_p[:B, :n_cls], fea_p[:B, :]


def lstm_reference(x, params):
    """Pure-JAX reference (mirrors torch.nn.LSTM + Linear), f32 throughout."""
    B, T, I = x.shape
    H = params["w_hh"].shape[1]
    wih_t = params["w_ih"].T
    whh_t = params["w_hh"].T
    b = params["b_ih"] + params["b_hh"]

    def step(carry, x_t):
        h, c = carry
        gates = x_t @ wih_t + h @ whh_t + b
        i = jax.nn.sigmoid(gates[:, 0 * H:1 * H])
        f = jax.nn.sigmoid(gates[:, 1 * H:2 * H])
        g = jnp.tanh(gates[:, 2 * H:3 * H])
        o = jax.nn.sigmoid(gates[:, 3 * H:4 * H])
        c = f * c + i * g
        h = o * jnp.tanh(c)
        return (h, c), h

    (h, _), _ = lax.scan(step, (jnp.zeros((B, H)), jnp.zeros((B, H))),
                         jnp.transpose(x, (1, 0, 2)))
    fea = h
    y = fea @ params["w_c"].T + params["b_c"]
    return y, fea


def init_params(key, input_size=8, hidden_size=128, n_classes=4):
    ks = jax.random.split(key, 6)
    s = 1.0 / jnp.sqrt(hidden_size)
    u = lambda k, shp: jax.random.uniform(k, shp, jnp.float32, -s, s)
    return {
        "w_ih": u(ks[0], (4 * hidden_size, input_size)),
        "w_hh": u(ks[1], (4 * hidden_size, hidden_size)),
        "b_ih": u(ks[2], (4 * hidden_size,)),
        "b_hh": u(ks[3], (4 * hidden_size,)),
        "w_c": u(ks[4], (n_classes, hidden_size)),
        "b_c": u(ks[5], (n_classes,)),
    }


if __name__ == "__main__":
    key = jax.random.PRNGKey(0)
    k_x, k_p = jax.random.split(key)

    B, T, I, H, C = 2, 8, 8, 128, 4
    x = jax.random.normal(k_x, (B, T, I), jnp.float32)
    params = init_params(k_p, input_size=I, hidden_size=H, n_classes=C)

    y_ref, fea_ref = lstm_reference(x, params)

    # Default path: bf16 recurrent weights on every generation (f32 gate math
    # and f32 accumulation).  Loose tolerance covers bf16 re-quantization of h
    # over T=8 steps.
    prep_bf16 = prepare_params(params)                       # whh_dtype=bf16
    fwd = jax.jit(lambda xx: lstm_forward(xx, prep_bf16))
    y, fea = jax.block_until_ready(fwd(x))
    assert y.shape == (B, C) and fea.shape == (B, H)
    assert jnp.allclose(y, y_ref, atol=5e-2, rtol=5e-2)
    assert jnp.allclose(fea, fea_ref, atol=5e-2, rtol=5e-2)

    # Full-precision recurrent weights: exact match against the reference.
    prep_f32 = prepare_params(params, whh_dtype=jnp.float32)
    fwd_f32 = jax.jit(lambda xx: lstm_forward(xx, prep_f32))
    y32, fea32 = jax.block_until_ready(fwd_f32(x))
    assert jnp.allclose(y32, y_ref, atol=1e-4, rtol=1e-4)
    assert jnp.allclose(fea32, fea_ref, atol=1e-4, rtol=1e-4)

    print("KERNEL_OK")
</pallas_src>

<mosaic_0001>
module attributes {stable_mosaic.version = 11 : i64} {
  func.func @lstm_kernel(%arg0: i32, %arg1: memref<64x8xf32, #tpu.memory_space<vmem>>, %arg2: memref<8x512xf32, #tpu.memory_space<vmem>>, %arg3: memref<128x512xbf16, #tpu.memory_space<any>>, %arg4: memref<1x512xf32, #tpu.memory_space<vmem>>, %arg5: memref<128x128xf32, #tpu.memory_space<any>>, %arg6: memref<1x128xf32, #tpu.memory_space<vmem>>, %arg7: memref<8x128xf32, #tpu.memory_space<vmem>>, %arg8: memref<8x128xf32, #tpu.memory_space<vmem>>, %arg9: memref<64x512xf32, #tpu.memory_space<vmem>>, %arg10: memref<128x512xbf16, #tpu.memory_space<vmem>>, %arg11: memref<128x128xf32, #tpu.memory_space<vmem>>, %arg12: memref<2x!tpu.dma_semaphore, #tpu.memory_space<semaphore_mem>>) attributes {dimension_semantics = [#tpu.dimension_semantics<arbitrary>], iteration_bounds = array<i64: 1>, scalar_prefetch = 0 : i64, scratch_operands = 4 : i64, tpu.core_type = #tpu.core_type<tc>, window_params = [{pipeline_mode = #tpu.pipeline_mode<synchronous>, transform_indices = @transform_0, window_bounds = array<i64: 64, 8>}, {pipeline_mode = #tpu.pipeline_mode<synchronous>, transform_indices = @transform_1, window_bounds = array<i64: 8, 512>}, {}, {pipeline_mode = #tpu.pipeline_mode<synchronous>, transform_indices = @transform_3, window_bounds = array<i64: 1, 512>}, {}, {pipeline_mode = #tpu.pipeline_mode<synchronous>, transform_indices = @transform_5, window_bounds = array<i64: 1, 128>}, {pipeline_mode = #tpu.pipeline_mode<synchronous>, transform_indices = @transform_6, window_bounds = array<i64: 8, 128>}, {pipeline_mode = #tpu.pipeline_mode<synchronous>, transform_indices = @transform_7, window_bounds = array<i64: 8, 128>}]} {
    %c0_i32 = arith.constant 0 : i32
    %0 = tpu.memref_slice %arg12[%c0_i32] : memref<2x!tpu.dma_semaphore, #tpu.memory_space<semaphore_mem>> -> memref<1x!tpu.dma_semaphore, #tpu.memory_space<semaphore_mem>>
    %1 = tpu.memref_squeeze %0 : memref<1x!tpu.dma_semaphore, #tpu.memory_space<semaphore_mem>> -> memref<!tpu.dma_semaphore, #tpu.memory_space<semaphore_mem>>
    tpu.enqueue_dma source(%arg3 : memref<128x512xbf16, #tpu.memory_space<any>>) target(%arg10 : memref<128x512xbf16, #tpu.memory_space<vmem>>) target_semaphore(%1 : memref<!tpu.dma_semaphore, #tpu.memory_space<semaphore_mem>>)
    %c1_i32 = arith.constant 1 : i32
    %2 = tpu.memref_slice %arg12[%c1_i32] : memref<2x!tpu.dma_semaphore, #tpu.memory_space<semaphore_mem>> -> memref<1x!tpu.dma_semaphore, #tpu.memory_space<semaphore_mem>>
    %3 = tpu.memref_squeeze %2 : memref<1x!tpu.dma_semaphore, #tpu.memory_space<semaphore_mem>> -> memref<!tpu.dma_semaphore, #tpu.memory_space<semaphore_mem>>
    tpu.enqueue_dma source(%arg5 : memref<128x128xf32, #tpu.memory_space<any>>) target(%arg11 : memref<128x128xf32, #tpu.memory_space<vmem>>) target_semaphore(%3 : memref<!tpu.dma_semaphore, #tpu.memory_space<semaphore_mem>>)
    %c0 = arith.constant 0 : index
    %c0_0 = arith.constant 0 : index
    %4 = vector.load %arg1[%c0, %c0_0] : memref<64x8xf32, #tpu.memory_space<vmem>>, vector<64x8xf32>
    %c0_1 = arith.constant 0 : index
    %c0_2 = arith.constant 0 : index
    %5 = vector.load %arg2[%c0_1, %c0_2] : memref<8x512xf32, #tpu.memory_space<vmem>>, vector<8x512xf32>
    %cst = arith.constant dense<0.000000e+00> : vector<64x512xf32>
    %6 = tpu.matmul %4, %5, %cst {dimension_numbers = #tpu.dot_dimension_numbers<[1], [0], [0], [1], [0, 0, 1, 1], [], []>} : vector<64x8xf32>, vector<8x512xf32>, vector<64x512xf32> -> vector<64x512xf32>
    %c0_3 = arith.constant 0 : index
    %c0_4 = arith.constant 0 : index
    %7 = vector.load %arg4[%c0_3, %c0_4] : memref<1x512xf32, #tpu.memory_space<vmem>>, vector<1x512xf32>
    %8 = vector.broadcast %7 : vector<1x512xf32> to vector<64x512xf32>
    %9 = arith.addf %6, %8 : vector<64x512xf32>
    %c0_5 = arith.constant 0 : index
    %c0_6 = arith.constant 0 : index
    %10 = vector.load %arg9[%c0_5, %c0_6] : memref<64x512xf32, #tpu.memory_space<vmem>>, vector<64x512xf32>
    tpu.vector_store %arg9[%c0_5, %c0_6], %9 {strides = array<i32>} : memref<64x512xf32, #tpu.memory_space<vmem>>, vector<64x512xf32>,
    %c0_7 = arith.constant 0 : index
    %c0_8 = arith.constant 0 : index
    %11 = vector.load %arg9[%c0_7, %c0_8] : memref<64x512xf32, #tpu.memory_space<vmem>>, vector<8x512xf32>
    %cst_9 = arith.constant 0.000000e+00 : f32
    %12 = vector.broadcast %cst_9 : f32 to vector<8x128xf32>
    %13 = vector.extract_strided_slice %11 {offsets = [0, 0], sizes = [8, 384], strides = [1, 1]} : vector<8x512xf32> to vector<8x384xf32>
    %14 = arith.negf %13 : vector<8x384xf32>
    %15 = math.exp %14 : vector<8x384xf32>
    %cst_10 = arith.constant 1.000000e+00 : f32
    %16 = vector.broadcast %cst_10 : f32 to vector<8x384xf32>
    %17 = arith.addf %16, %15 : vector<8x384xf32>
    %18 = arith.divf %16, %17 : vector<8x384xf32>
    %19 = vector.extract_strided_slice %18 {offsets = [0, 0], sizes = [8, 128], strides = [1, 1]} : vector<8x384xf32> to vector<8x128xf32>
    %20 = vector.extract_strided_slice %18 {offsets = [0, 128], sizes = [8, 128], strides = [1, 1]} : vector<8x384xf32> to vector<8x128xf32>
    %21 = vector.extract_strided_slice %18 {offsets = [0, 256], sizes = [8, 128], strides = [1, 1]} : vector<8x384xf32> to vector<8x128xf32>
    %22 = vector.extract_strided_slice %11 {offsets = [0, 384], sizes = [8, 128], strides = [1, 1]} : vector<8x512xf32> to vector<8x128xf32>
    %23 = math.tanh %22 : vector<8x128xf32>
    %24 = arith.mulf %20, %12 : vector<8x128xf32>
    %25 = arith.mulf %19, %23 : vector<8x128xf32>
    %26 = arith.addf %24, %25 : vector<8x128xf32>
    %27 = math.tanh %26 : vector<8x128xf32>
    %28 = arith.mulf %21, %27 : vector<8x128xf32>
    %c0_i32_11 = arith.constant 0 : i32
    %29 = tpu.memref_slice %arg12[%c0_i32_11] : memref<2x!tpu.dma_semaphore, #tpu.memory_space<semaphore_mem>> -> memref<1x!tpu.dma_semaphore, #tpu.memory_space<semaphore_mem>>
    %30 = tpu.memref_squeeze %29 : memref<1x!tpu.dma_semaphore, #tpu.memory_space<semaphore_mem>> -> memref<!tpu.dma_semaphore, #tpu.memory_space<semaphore_mem>>
    tpu.wait_dma2 semaphore(%30 : memref<!tpu.dma_semaphore, #tpu.memory_space<semaphore_mem>>) src(%arg3 : memref<128x512xbf16, #tpu.memory_space<any>>) dst(%arg10 : memref<128x512xbf16, #tpu.memory_space<vmem>>)
    %c0_12 = arith.constant 0 : index
    %c0_13 = arith.constant 0 : index
    %31 = vector.load %arg10[%c0_12, %c0_13] : memref<128x512xbf16, #tpu.memory_space<vmem>>, vector<128x512xbf16>
    %c8 = arith.constant 8 : index
    %c0_14 = arith.constant 0 : index
    %32 = vector.load %arg9[%c8, %c0_14] : memref<64x512xf32, #tpu.memory_space<vmem>>, vector<8x512xf32>
    %33 = arith.truncf %28 : vector<8x128xf32> to vector<8x128xbf16>
    %cst_15 = arith.constant dense<0.000000e+00> : vector<8x512xf32>
    %34 = tpu.matmul %33, %31, %cst_15 {dimension_numbers = #tpu.dot_dimension_numbers<[1], [0], [0], [1], [0, 0, 1, 1], [], []>} : vector<8x128xbf16>, vector<128x512xbf16>, vector<8x512xf32> -> vector<8x512xf32>
    %35 = arith.addf %32, %34 : vector<8x512xf32>
    %36 = vector.extract_strided_slice %35 {offsets = [0, 0], sizes = [8, 384], strides = [1, 1]} : vector<8x512xf32> to vector<8x384xf32>
    %37 = arith.negf %36 : vector<8x384xf32>
    %38 = math.exp %37 : vector<8x384xf32>
    %cst_16 = arith.constant 1.000000e+00 : f32
    %39 = vector.broadcast %cst_16 : f32 to vector<8x384xf32>
    %40 = arith.addf %39, %38 : vector<8x384xf32>
    %41 = arith.divf %39, %40 : vector<8x384xf32>
    %42 = vector.extract_strided_slice %41 {offsets = [0, 0], sizes = [8, 128], strides = [1, 1]} : vector<8x384xf32> to vector<8x128xf32>
    %43 = vector.extract_strided_slice %41 {offsets = [0, 128], sizes = [8, 128], strides = [1, 1]} : vector<8x384xf32> to vector<8x128xf32>
    %44 = vector.extract_strided_slice %41 {offsets = [0, 256], sizes = [8, 128], strides = [1, 1]} : vector<8x384xf32> to vector<8x128xf32>
    %45 = vector.extract_strided_slice %35 {offsets = [0, 384], sizes = [8, 128], strides = [1, 1]} : vector<8x512xf32> to vector<8x128xf32>
    %46 = math.tanh %45 : vector<8x128xf32>
    %47 = arith.mulf %43, %26 : vector<8x128xf32>
    %48 = arith.mulf %42, %46 : vector<8x128xf32>
    %49 = arith.addf %47, %48 : vector<8x128xf32>
    %50 = math.tanh %49 : vector<8x128xf32>
    %51 = arith.mulf %44, %50 : vector<8x128xf32>
    %c0_17 = arith.constant 0 : index
    %c0_18 = arith.constant 0 : index
    %52 = vector.load %arg10[%c0_17, %c0_18] : memref<128x512xbf16, #tpu.memory_space<vmem>>, vector<128x512xbf16>
    %c16 = arith.constant 16 : index
    %c0_19 = arith.constant 0 : index
    %53 = vector.load %arg9[%c16, %c0_19] : memref<64x512xf32, #tpu.memory_space<vmem>>, vector<8x512xf32>
    %54 = arith.truncf %51 : vector<8x128xf32> to vector<8x128xbf16>
    %cst_20 = arith.constant dense<0.000000e+00> : vector<8x512xf32>
    %55 = tpu.matmul %54, %52, %cst_20 {dimension_numbers = #tpu.dot_dimension_numbers<[1], [0], [0], [1], [0, 0, 1, 1], [], []>} : vector<8x128xbf16>, vector<128x512xbf16>, vector<8x512xf32> -> vector<8x512xf32>
    %56 = arith.addf %53, %55 : vector<8x512xf32>
    %57 = vector.extract_strided_slice %56 {offsets = [0, 0], sizes = [8, 384], strides = [1, 1]} : vector<8x512xf32> to vector<8x384xf32>
    %58 = arith.negf %57 : vector<8x384xf32>
    %59 = math.exp %58 : vector<8x384xf32>
    %cst_21 = arith.constant 1.000000e+00 : f32
    %60 = vector.broadcast %cst_21 : f32 to vector<8x384xf32>
    %61 = arith.addf %60, %59 : vector<8x384xf32>
    %62 = arith.divf %60, %61 : vector<8x384xf32>
    %63 = vector.extract_strided_slice %62 {offsets = [0, 0], sizes = [8, 128], strides = [1, 1]} : vector<8x384xf32> to vector<8x128xf32>
    %64 = vector.extract_strided_slice %62 {offsets = [0, 128], sizes = [8, 128], strides = [1, 1]} : vector<8x384xf32> to vector<8x128xf32>
    %65 = vector.extract_strided_slice %62 {offsets = [0, 256], sizes = [8, 128], strides = [1, 1]} : vector<8x384xf32> to vector<8x128xf32>
    %66 = vector.extract_strided_slice %56 {offsets = [0, 384], sizes = [8, 128], strides = [1, 1]} : vector<8x512xf32> to vector<8x128xf32>
    %67 = math.tanh %66 : vector<8x128xf32>
    %68 = arith.mulf %64, %49 : vector<8x128xf32>
    %69 = arith.mulf %63, %67 : vector<8x128xf32>
    %70 = arith.addf %68, %69 : vector<8x128xf32>
    %71 = math.tanh %70 : vector<8x128xf32>
    %72 = arith.mulf %65, %71 : vector<8x128xf32>
    %c0_22 = arith.constant 0 : index
    %c0_23 = arith.constant 0 : index
    %73 = vector.load %arg10[%c0_22, %c0_23] : memref<128x512xbf16, #tpu.memory_space<vmem>>, vector<128x512xbf16>
    %c24 = arith.constant 24 : index
    %c0_24 = arith.constant 0 : index
    %74 = vector.load %arg9[%c24, %c0_24] : memref<64x512xf32, #tpu.memory_space<vmem>>, vector<8x512xf32>
    %75 = arith.truncf %72 : vector<8x128xf32> to vector<8x128xbf16>
    %cst_25 = arith.constant dense<0.000000e+00> : vector<8x512xf32>
    %76 = tpu.matmul %75, %73, %cst_25 {dimension_numbers = #tpu.dot_dimension_numbers<[1], [0], [0], [1], [0, 0, 1, 1], [], []>} : vector<8x128xbf16>, vector<128x512xbf16>, vector<8x512xf32> -> vector<8x512xf32>
    %77 = arith.addf %74, %76 : vector<8x512xf32>
    %78 = vector.extract_strided_slice %77 {offsets = [0, 0], sizes = [8, 384], strides = [1, 1]} : vector<8x512xf32> to vector<8x384xf32>
    %79 = arith.negf %78 : vector<8x384xf32>
    %80 = math.exp %79 : vector<8x384xf32>
    %cst_26 = arith.constant 1.000000e+00 : f32
    %81 = vector.broadcast %cst_26 : f32 to vector<8x384xf32>
    %82 = arith.addf %81, %80 : vector<8x384xf32>
    %83 = arith.divf %81, %82 : vector<8x384xf32>
    %84 = vector.extract_strided_slice %83 {offsets = [0, 0], sizes = [8, 128], strides = [1, 1]} : vector<8x384xf32> to vector<8x128xf32>
    %85 = vector.extract_strided_slice %83 {offsets = [0, 128], sizes = [8, 128], strides = [1, 1]} : vector<8x384xf32> to vector<8x128xf32>
    %86 = vector.extract_strided_slice %83 {offsets = [0, 256], sizes = [8, 128], strides = [1, 1]} : vector<8x384xf32> to vector<8x128xf32>
    %87 = vector.extract_strided_slice %77 {offsets = [0, 384], sizes = [8, 128], strides = [1, 1]} : vector<8x512xf32> to vector<8x128xf32>
    %88 = math.tanh %87 : vector<8x128xf32>
    %89 = arith.mulf %85, %70 : vector<8x128xf32>
    %90 = arith.mulf %84, %88 : vector<8x128xf32>
    %91 = arith.addf %89, %90 : vector<8x128xf32>
    %92 = math.tanh %91 : vector<8x128xf32>
    %93 = arith.mulf %86, %92 : vector<8x128xf32>
    %c0_27 = arith.constant 0 : index
    %c0_28 = arith.constant 0 : index
    %94 = vector.load %arg10[%c0_27, %c0_28] : memref<128x512xbf16, #tpu.memory_space<vmem>>, vector<128x512xbf16>
    %c32 = arith.constant 32 : index
    %c0_29 = arith.constant 0 : index
    %95 = vector.load %arg9[%c32, %c0_29] : memref<64x512xf32, #tpu.memory_space<vmem>>, vector<8x512xf32>
    %96 = arith.truncf %93 : vector<8x128xf32> to vector<8x128xbf16>
    %cst_30 = arith.constant dense<0.000000e+00> : vector<8x512xf32>
    %97 = tpu.matmul %96, %94, %cst_30 {dimension_numbers = #tpu.dot_dimension_numbers<[1], [0], [0], [1], [0, 0, 1, 1], [], []>} : vector<8x128xbf16>, vector<128x512xbf16>, vector<8x512xf32> -> vector<8x512xf32>
    %98 = arith.addf %95, %97 : vector<8x512xf32>
    %99 = vector.extract_strided_slice %98 {offsets = [0, 0], sizes = [8, 384], strides = [1, 1]} : vector<8x512xf32> to vector<8x384xf32>
    %100 = arith.negf %99 : vector<8x384xf32>
    %101 = math.exp %100 : vector<8x384xf32>
    %cst_31 = arith.constant 1.000000e+00 : f32
    %102 = vector.broadcast %cst_31 : f32 to vector<8x384xf32>
    %103 = arith.addf %102, %101 : vector<8x384xf32>
    %104 = arith.divf %102, %103 : vector<8x384xf32>
    %105 = vector.extract_strided_slice %104 {offsets = [0, 0], sizes = [8, 128], strides = [1, 1]} : vector<8x384xf32> to vector<8x128xf32>
    %106 = vector.extract_strided_slice %104 {offsets = [0, 128], sizes = [8, 128], strides = [1, 1]} : vector<8x384xf32> to vector<8x128xf32>
    %107 = vector.extract_strided_slice %104 {offsets = [0, 256], sizes = [8, 128], strides = [1, 1]} : vector<8x384xf32> to vector<8x128xf32>
    %108 = vector.extract_strided_slice %98 {offsets = [0, 384], sizes = [8, 128], strides = [1, 1]} : vector<8x512xf32> to vector<8x128xf32>
    %109 = math.tanh %108 : vector<8x128xf32>
    %110 = arith.mulf %106, %91 : vector<8x128xf32>
    %111 = arith.mulf %105, %109 : vector<8x128xf32>
    %112 = arith.addf %110, %111 : vector<8x128xf32>
    %113 = math.tanh %112 : vector<8x128xf32>
    %114 = arith.mulf %107, %113 : vector<8x128xf32>
    %c0_32 = arith.constant 0 : index
    %c0_33 = arith.constant 0 : index
    %115 = vector.load %arg10[%c0_32, %c0_33] : memref<128x512xbf16, #tpu.memory_space<vmem>>, vector<128x512xbf16>
    %c40 = arith.constant 40 : index
    %c0_34 = arith.constant 0 : index
    %116 = vector.load %arg9[%c40, %c0_34] : memref<64x512xf32, #tpu.memory_space<vmem>>, vector<8x512xf32>
    %117 = arith.truncf %114 : vector<8x128xf32> to vector<8x128xbf16>
    %cst_35 = arith.constant dense<0.000000e+00> : vector<8x512xf32>
    %118 = tpu.matmul %117, %115, %cst_35 {dimension_numbers = #tpu.dot_dimension_numbers<[1], [0], [0], [1], [0, 0, 1, 1], [], []>} : vector<8x128xbf16>, vector<128x512xbf16>, vector<8x512xf32> -> vector<8x512xf32>
    %119 = arith.addf %116, %118 : vector<8x512xf32>
    %120 = vector.extract_strided_slice %119 {offsets = [0, 0], sizes = [8, 384], strides = [1, 1]} : vector<8x512xf32> to vector<8x384xf32>
    %121 = arith.negf %120 : vector<8x384xf32>
    %122 = math.exp %121 : vector<8x384xf32>
    %cst_36 = arith.constant 1.000000e+00 : f32
    %123 = vector.broadcast %cst_36 : f32 to vector<8x384xf32>
    %124 = arith.addf %123, %122 : vector<8x384xf32>
    %125 = arith.divf %123, %124 : vector<8x384xf32>
    %126 = vector.extract_strided_slice %125 {offsets = [0, 0], sizes = [8, 128], strides = [1, 1]} : vector<8x384xf32> to vector<8x128xf32>
    %127 = vector.extract_strided_slice %125 {offsets = [0, 128], sizes = [8, 128], strides = [1, 1]} : vector<8x384xf32> to vector<8x128xf32>
    %128 = vector.extract_strided_slice %125 {offsets = [0, 256], sizes = [8, 128], strides = [1, 1]} : vector<8x384xf32> to vector<8x128xf32>
    %129 = vector.extract_strided_slice %119 {offsets = [0, 384], sizes = [8, 128], strides = [1, 1]} : vector<8x512xf32> to vector<8x128xf32>
    %130 = math.tanh %129 : vector<8x128xf32>
    %131 = arith.mulf %127, %112 : vector<8x128xf32>
    %132 = arith.mulf %126, %130 : vector<8x128xf32>
    %133 = arith.addf %131, %132 : vector<8x128xf32>
    %134 = math.tanh %133 : vector<8x128xf32>
    %135 = arith.mulf %128, %134 : vector<8x128xf32>
    %c0_37 = arith.constant 0 : index
    %c0_38 = arith.constant 0 : index
    %136 = vector.load %arg10[%c0_37, %c0_38] : memref<128x512xbf16, #tpu.memory_space<vmem>>, vector<128x512xbf16>
    %c48 = arith.constant 48 : index
    %c0_39 = arith.constant 0 : index
    %137 = vector.load %arg9[%c48, %c0_39] : memref<64x512xf32, #tpu.memory_space<vmem>>, vector<8x512xf32>
    %138 = arith.truncf %135 : vector<8x128xf32> to vector<8x128xbf16>
    %cst_40 = arith.constant dense<0.000000e+00> : vector<8x512xf32>
    %139 = tpu.matmul %138, %136, %cst_40 {dimension_numbers = #tpu.dot_dimension_numbers<[1], [0], [0], [1], [0, 0, 1, 1], [], []>} : vector<8x128xbf16>, vector<128x512xbf16>, vector<8x512xf32> -> vector<8x512xf32>
    %140 = arith.addf %137, %139 : vector<8x512xf32>
    %141 = vector.extract_strided_slice %140 {offsets = [0, 0], sizes = [8, 384], strides = [1, 1]} : vector<8x512xf32> to vector<8x384xf32>
    %142 = arith.negf %141 : vector<8x384xf32>
    %143 = math.exp %142 : vector<8x384xf32>
    %cst_41 = arith.constant 1.000000e+00 : f32
    %144 = vector.broadcast %cst_41 : f32 to vector<8x384xf32>
    %145 = arith.addf %144, %143 : vector<8x384xf32>
    %146 = arith.divf %144, %145 : vector<8x384xf32>
    %147 = vector.extract_strided_slice %146 {offsets = [0, 0], sizes = [8, 128], strides = [1, 1]} : vector<8x384xf32> to vector<8x128xf32>
    %148 = vector.extract_strided_slice %146 {offsets = [0, 128], sizes = [8, 128], strides = [1, 1]} : vector<8x384xf32> to vector<8x128xf32>
    %149 = vector.extract_strided_slice %146 {offsets = [0, 256], sizes = [8, 128], strides = [1, 1]} : vector<8x384xf32> to vector<8x128xf32>
    %150 = vector.extract_strided_slice %140 {offsets = [0, 384], sizes = [8, 128], strides = [1, 1]} : vector<8x512xf32> to vector<8x128xf32>
    %151 = math.tanh %150 : vector<8x128xf32>
    %152 = arith.mulf %148, %133 : vector<8x128xf32>
    %153 = arith.mulf %147, %151 : vector<8x128xf32>
    %154 = arith.addf %152, %153 : vector<8x128xf32>
    %155 = math.tanh %154 : vector<8x128xf32>
    %156 = arith.mulf %149, %155 : vector<8x128xf32>
    %c0_42 = arith.constant 0 : index
    %c0_43 = arith.constant 0 : index
    %157 = vector.load %arg10[%c0_42, %c0_43] : memref<128x512xbf16, #tpu.memory_space<vmem>>, vector<128x512xbf16>
    %c56 = arith.constant 56 : index
    %c0_44 = arith.constant 0 : index
    %158 = vector.load %arg9[%c56, %c0_44] : memref<64x512xf32, #tpu.memory_space<vmem>>, vector<8x512xf32>
    %159 = arith.truncf %156 : vector<8x128xf32> to vector<8x128xbf16>
    %cst_45 = arith.constant dense<0.000000e+00> : vector<8x512xf32>
    %160 = tpu.matmul %159, %157, %cst_45 {dimension_numbers = #tpu.dot_dimension_numbers<[1], [0], [0], [1], [0, 0, 1, 1], [], []>} : vector<8x128xbf16>, vector<128x512xbf16>, vector<8x512xf32> -> vector<8x512xf32>
    %161 = arith.addf %158, %160 : vector<8x512xf32>
    %162 = vector.extract_strided_slice %161 {offsets = [0, 0], sizes = [8, 384], strides = [1, 1]} : vector<8x512xf32> to vector<8x384xf32>
    %163 = arith.negf %162 : vector<8x384xf32>
    %164 = math.exp %163 : vector<8x384xf32>
    %cst_46 = arith.constant 1.000000e+00 : f32
    %165 = vector.broadcast %cst_46 : f32 to vector<8x384xf32>
    %166 = arith.addf %165, %164 : vector<8x384xf32>
    %167 = arith.divf %165, %166 : vector<8x384xf32>
    %168 = vector.extract_strided_slice %167 {offsets = [0, 0], sizes = [8, 128], strides = [1, 1]} : vector<8x384xf32> to vector<8x128xf32>
    %169 = vector.extract_strided_slice %167 {offsets = [0, 128], sizes = [8, 128], strides = [1, 1]} : vector<8x384xf32> to vector<8x128xf32>
    %170 = vector.extract_strided_slice %167 {offsets = [0, 256], sizes = [8, 128], strides = [1, 1]} : vector<8x384xf32> to vector<8x128xf32>
    %171 = vector.extract_strided_slice %161 {offsets = [0, 384], sizes = [8, 128], strides = [1, 1]} : vector<8x512xf32> to vector<8x128xf32>
    %172 = math.tanh %171 : vector<8x128xf32>
    %173 = arith.mulf %169, %154 : vector<8x128xf32>
    %174 = arith.mulf %168, %172 : vector<8x128xf32>
    %175 = arith.addf %173, %174 : vector<8x128xf32>
    %176 = math.tanh %175 : vector<8x128xf32>
    %177 = arith.mulf %170, %176 : vector<8x128xf32>
    %c0_47 = arith.constant 0 : index
    %c0_48 = arith.constant 0 : index
    %178 = vector.load %arg8[%c0_47, %c0_48] : memref<8x128xf32, #tpu.memory_space<vmem>>, vector<8x128xf32>
    tpu.vector_store %arg8[%c0_47, %c0_48], %177 {strides = array<i32>} : memref<8x128xf32, #tpu.memory_space<vmem>>, vector<8x128xf32>,
    %c1_i32_49 = arith.constant 1 : i32
    %179 = tpu.memref_slice %arg12[%c1_i32_49] : memref<2x!tpu.dma_semaphore, #tpu.memory_space<semaphore_mem>> -> memref<1x!tpu.dma_semaphore, #tpu.memory_space<semaphore_mem>>
    %180 = tpu.memref_squeeze %179 : memref<1x!tpu.dma_semaphore, #tpu.memory_space<semaphore_mem>> -> memref<!tpu.dma_semaphore, #tpu.memory_space<semaphore_mem>>
    tpu.wait_dma2 semaphore(%180 : memref<!tpu.dma_semaphore, #tpu.memory_space<semaphore_mem>>) src(%arg5 : memref<128x128xf32, #tpu.memory_space<any>>) dst(%arg11 : memref<128x128xf32, #tpu.memory_space<vmem>>)
    %c0_50 = arith.constant 0 : index
    %c0_51 = arith.constant 0 : index
    %181 = vector.load %arg11[%c0_50, %c0_51] : memref<128x128xf32, #tpu.memory_space<vmem>>, vector<128x128xf32>
    %cst_52 = arith.constant dense<0.000000e+00> : vector<8x128xf32>
    %182 = tpu.matmul %177, %181, %cst_52 {dimension_numbers = #tpu.dot_dimension_numbers<[1], [0], [0], [1], [0, 0, 1, 1], [], []>} : vector<8x128xf32>, vector<128x128xf32>, vector<8x128xf32> -> vector<8x128xf32>
    %c0_53 = arith.constant 0 : index
    %c0_54 = arith.constant 0 : index
    %183 = vector.load %arg6[%c0_53, %c0_54] : memref<1x128xf32, #tpu.memory_space<vmem>>, vector<1x128xf32>
    %184 = vector.broadcast %183 : vector<1x128xf32> to vector<8x128xf32>
    %185 = arith.addf %182, %184 : vector<8x128xf32>
    %c0_55 = arith.constant 0 : index
    %c0_56 = arith.constant 0 : index
    %186 = vector.load %arg7[%c0_55, %c0_56] : memref<8x128xf32, #tpu.memory_space<vmem>>, vector<8x128xf32>
    tpu.vector_store %arg7[%c0_55, %c0_56], %185 {strides = array<i32>} : memref<8x128xf32, #tpu.memory_space<vmem>>, vector<8x128xf32>,
    return
  }
  func.func @transform_0(%arg0: i32) -> (i32, i32) {
    %c0_i32 = arith.constant 0 : i32
    %c0_i32_0 = arith.constant 0 : i32
    %c0_i32_1 = arith.constant 0 : i32
    return %c0_i32, %c0_i32_0 : i32, i32
  }
  func.func @transform_1(%arg0: i32) -> (i32, i32) {
    %c0_i32 = arith.constant 0 : i32
    %c0_i32_0 = arith.constant 0 : i32
    %c0_i32_1 = arith.constant 0 : i32
    return %c0_i32, %c0_i32_0 : i32, i32
  }
  func.func @transform_3(%arg0: i32) -> (i32, i32) {
    %c0_i32 = arith.constant 0 : i32
    %c0_i32_0 = arith.constant 0 : i32
    %c0_i32_1 = arith.constant 0 : i32
    return %c0_i32, %c0_i32_0 : i32, i32
  }
  func.func @transform_5(%arg0: i32) -> (i32, i32) {
    %c0_i32 = arith.constant 0 : i32
    %c0_i32_0 = arith.constant 0 : i32
    %c0_i32_1 = arith.constant 0 : i32
    return %c0_i32, %c0_i32_0 : i32, i32
  }
  func.func @transform_6(%arg0: i32) -> (i32, i32) {
    %c0_i32 = arith.constant 0 : i32
    %c0_i32_0 = arith.constant 0 : i32
    %c0_i32_1 = arith.constant 0 : i32
    return %c0_i32, %c0_i32_0 : i32, i32
  }
  func.func @transform_7(%arg0: i32) -> (i32, i32) {
    %c0_i32 = arith.constant 0 : i32
    %c0_i32_0 = arith.constant 0 : i32
    %c0_i32_1 = arith.constant 0 : i32
    return %c0_i32, %c0_i32_0 : i32, i32
  }
}

</mosaic_0001>

<bundles_post_ra>
// kernel: _lambda_.1
= control target key start
LH: loop header
LB: loop body
LE: loop exit
PB: predicated region body
PF: predicated region fallthrough
CT: control target
= control target key end

     0   :  { %s1905_s27 = smov [#allocation3]   ;;  %s2589_s0 = inlined_call_operand.vmem [shape: f32[64,8], index: 0, kind: input, shape index: {}]   ;;  %s2590_s1 = inlined_call_operand.vmem [shape: f32[8,512], index: 1, kind: input, shape index: {}]   ;;  %s2591_s2 = inlined_call_operand.hbm [shape: bf16[128,512], index: 2, kind: input, shape index: {}]   ;;  %s2592_s3 = inlined_call_operand.vmem [shape: f32[1,512], index: 3, kind: input, shape index: {}]   ;;  %s2593_s4 = inlined_call_operand.vmem [shape: f32[128,128], index: 4, kind: input, shape index: {}]   ;;  %s2594_s5 = inlined_call_operand.vmem [shape: f32[1,128], index: 5, kind: input, shape index: {}]   ;;  %s2595_s6 = inlined_call_operand.vmem [shape: f32[8,128], index: 6, kind: output, shape index: {0}]   ;;  %s2596_s7 = inlined_call_operand.vmem [shape: f32[8,128], index: 7, kind: output, shape index: {1}]  }
   0x1   :  { %s28_s26 = sshll.u32 %s2591_s2, 4  ;;  %s30_s28 = sshll.u32 %s1905_s27, 4  ;;  %v1952_v0 = vld [vmem:[%s2593_s4] sm:$0xff]  ;;  %v1957_v1 = vld [vmem:[%s2593_s4 + $0x8] sm:$0xff]  ;;  %v1962_v2 = vld [vmem:[%s2593_s4 + $0x10] sm:$0xff]  ;;  %s29_s26 = int_to_ptr.hbm [resolvable:$true] %s28_s26  ;;  %s31_s28 = int_to_ptr.vmem [resolvable:$true] %s30_s28 }
   0x2   :  { %2597 = vst [vmem:[#allocation13_spill] sm:$0xff] %v1952_v0  ;;  %v1967_v3 = vld [vmem:[%s2593_s4 + $0x18] sm:$0xff]  ;;  %v1972_v4 = vld [vmem:[%s2593_s4 + $0x20] sm:$0xff]  ;;  %v1977_v5 = vld [vmem:[%s2593_s4 + $0x28] sm:$0xff]  ;;  %33 = dma.hbm_to_vmem [thread:$0]  %s29_s26, 4096, %s31_s28, [#allocation5] }
   0x3   :  { %2598 = vst [vmem:[#allocation14_spill] sm:$0xff] %v1957_v1  ;;  %v1982_v6 = vld [vmem:[%s2593_s4 + $0x30] sm:$0xff]  ;;  %v1987_v7 = vld [vmem:[%s2593_s4 + $0x38] sm:$0xff]  ;;  %v1992_v8 = vld [vmem:[%s2593_s4 + $0x40] sm:$0xff] }
   0x4   :  { %2599 = vst [vmem:[#allocation15_spill] sm:$0xff] %v1962_v2  ;;  %v1997_v9 = vld [vmem:[%s2593_s4 + $0x48] sm:$0xff]  ;;  %v2002_v10 = vld [vmem:[%s2593_s4 + $0x50] sm:$0xff]  ;;  %v2007_v11 = vld [vmem:[%s2593_s4 + $0x58] sm:$0xff] }
   0x5   :  { %2600 = vst [vmem:[#allocation16_spill] sm:$0xff] %v1967_v3  ;;  %v2012_v12 = vld [vmem:[%s2593_s4 + $0x60] sm:$0xff]  ;;  %v2017_v13 = vld [vmem:[%s2593_s4 + $0x68] sm:$0xff]  ;;  %v2022_v14 = vld [vmem:[%s2593_s4 + $0x70] sm:$0xff] }
   0x6   :  { %2601 = vst [vmem:[#allocation17_spill] sm:$0xff] %v1972_v4  ;;  %v2027_v15 = vld [vmem:[%s2593_s4 + $0x78] sm:$0xff] }
   0x7   :  { %2602 = vst [vmem:[#allocation18_spill] sm:$0xff] %v1977_v5 }
   0x8   :  { %2603 = vst [vmem:[#allocation19_spill] sm:$0xff] %v1982_v6 }
   0x9   :  { %2604 = vst [vmem:[#allocation20_spill] sm:$0xff] %v1987_v7 }
   0xa   :  { %2605 = vst [vmem:[#allocation21_spill] sm:$0xff] %v1992_v8 }
   0xb   :  { %2606 = vst [vmem:[#allocation22_spill] sm:$0xff] %v1997_v9 }
   0xc   :  { %2607 = vst [vmem:[#allocation23_spill] sm:$0xff] %v2002_v10 }
   0xd   :  { %2608 = vst [vmem:[#allocation24_spill] sm:$0xff] %v2007_v11 }
   0xe   :  { %2609 = vst [vmem:[#allocation25_spill] sm:$0xff] %v2012_v12 }
   0xf   :  { %2610 = vst [vmem:[#allocation26_spill] sm:$0xff] %v2017_v13 }
  0x10   :  { %2611 = vst [vmem:[#allocation27_spill] sm:$0xff] %v2022_v14 }
  0x11   :  { %2612 = vst [vmem:[#allocation28_spill] sm:$0xff] %v2027_v15 }
  0x12   :  { %82 = vsyncadd [#allocation5 + $0x1], 2048  ;;  %v91_v16 = vld [vmem:[%s2590_s1] sm:$0xff]  ;;  %vm105_vm0 = vcmask 64512   ;;  %v89_v18 = vld [vmem:[%s2589_s0 + $0x30] sm:$0xff] }
  0x13   :  { %v83_v17 = vld [vmem:[%s2589_s0] sm:$0xff]  ;;  %145 = vmatpush.msra.mxu0 %v91_v16  ;;  %1745 = vmatpush.msra.mxu1 %v91_v16  ;;  %v90_v19 = vld [vmem:[%s2589_s0 + $0x38] sm:$0xff]  ;;  %v93_v20 = vld [vmem:[%s2590_s1 + $0x10] sm:$0xff] }
  0x14   :  { %1746 = vmatpush.msra.mxu2 %v91_v16  ;;  %1527 = vmatmul.msk.f32.vlgmr.msra.gmra.mxu0 %vm105_vm0, %v83_v17  ;;  %v92_v21 = vld [vmem:[%s2590_s1 + $0x8] sm:$0xff]  ;;  %v94_v22 = vld [vmem:[%s2590_s1 + $0x18] sm:$0xff]  ;;  %v85_v24 = vld [vmem:[%s2589_s0 + $0x10] sm:$0xff] }
  0x15   :  { %1533 = vmatmul.msk.f32.vlgmr.msra.gmra.mxu1 %vm105_vm0, %v89_v18  ;;  %1534 = vmatmul.msk.f32.vlgmr.msra.gmra.mxu2 %vm105_vm0, %v90_v19  ;;  %v84_v23 = vld [vmem:[%s2589_s0 + $0x8] sm:$0xff]  ;;  %v86_v25 = vld [vmem:[%s2589_s0 + $0x18] sm:$0xff]  ;;  %v87_v26 = vld [vmem:[%s2589_s0 + $0x20] sm:$0xff] }
  0x16   :  { %227 = vmatpush.msrb.mxu2 %v93_v20  ;;  %186 = vmatpush.msrb.mxu1 %v92_v21  ;;  %v88_v27 = vld [vmem:[%s2589_s0 + $0x28] sm:$0xff]  ;;  %v95_v28 = vld [vmem:[%s2592_s3] sm:$0xf] }
  0x17   :  { %268 = vmatpush.msra.mxu3 %v94_v22  ;;  %v2100_v29 = vperm.slane %v95_v28, 0  ;;  %v2106_v35 = vperm.slane %v95_v28, 1  ;;  %v2115_v46 = vperm.slane %v95_v28, 2  ;;  %v2118_v49 = vperm.slane %v95_v28, 3 }
  0x18   :  { %1551 = vmatmul.msk.f32.vlgmr.msra.gmra.mxu3 %vm105_vm0, %v83_v17 }
  0x1c   :  { %1528 = vmatmul.msk.f32.gmra.mxu0 %vm105_vm0, %v84_v23 }
  0x1d   :  { %1535 = vmatmul.msk.f32.vlgmr.msrb.gmra.mxu1 %vm105_vm0, %v83_v17  ;;  %1543 = vmatmul.msk.f32.vlgmr.msrb.gmra.mxu2 %vm105_vm0, %v83_v17 }
  0x20   :  { %1552 = vmatmul.msk.f32.gmra.mxu3 %vm105_vm0, %v84_v23 }
  0x24   :  { %1529 = vmatmul.msk.f32.gmra.mxu0 %vm105_vm0, %v85_v24 }
  0x25   :  { %1544 = vmatmul.msk.f32.gmra.mxu2 %vm105_vm0, %v84_v23  ;;  %1536 = vmatmul.msk.f32.gmra.mxu1 %vm105_vm0, %v84_v23 }
  0x28   :  { %1553 = vmatmul.msk.f32.gmra.mxu3 %vm105_vm0, %v85_v24 }
  0x2c   :  { %1530 = vmatmul.msk.f32.gmra.mxu0 %vm105_vm0, %v86_v25 }
  0x2d   :  { %1545 = vmatmul.msk.f32.gmra.mxu2 %vm105_vm0, %v85_v24  ;;  %1537 = vmatmul.msk.f32.gmra.mxu1 %vm105_vm0, %v85_v24 }
  0x30   :  { %1554 = vmatmul.msk.f32.gmra.mxu3 %vm105_vm0, %v86_v25 }
  0x34   :  { %1531 = vmatmul.msk.f32.gmra.mxu0 %vm105_vm0, %v87_v26 }
  0x35   :  { %1546 = vmatmul.msk.f32.gmra.mxu2 %vm105_vm0, %v86_v25  ;;  %1538 = vmatmul.msk.f32.gmra.mxu1 %vm105_vm0, %v86_v25 }
  0x38   :  { %1555 = vmatmul.msk.f32.gmra.mxu3 %vm105_vm0, %v87_v26 }
  0x3c   :  { %1532 = vmatmul.msk.f32.gmra.mxu0 %vm105_vm0, %v88_v27 }
  0x3d   :  { %1547 = vmatmul.msk.f32.gmra.mxu2 %vm105_vm0, %v87_v26  ;;  %1539 = vmatmul.msk.f32.gmra.mxu1 %vm105_vm0, %v87_v26 }
  0x40   :  { %1556 = vmatmul.msk.f32.gmra.mxu3 %vm105_vm0, %v88_v27 }
  0x45   :  { %1548 = vmatmul.msk.f32.gmra.mxu2 %vm105_vm0, %v88_v27  ;;  %1540 = vmatmul.msk.f32.gmra.mxu1 %vm105_vm0, %v88_v27 }
  0x48   :  { %1557 = vmatmul.msk.f32.gmra.mxu3 %vm105_vm0, %v89_v18 }
  0x4d   :  { %1549 = vmatmul.msk.f32.gmra.mxu2 %vm105_vm0, %v89_v18  ;;  %1541 = vmatmul.msk.f32.gmra.mxu1 %vm105_vm0, %v89_v18 }
  0x50   :  { %1558 = vmatmul.msk.f32.gmra.mxu3 %vm105_vm0, %v90_v19 }
  0x55   :  { %1550 = vmatmul.msk.f32.gmra.mxu2 %vm105_vm0, %v90_v19  ;;  %1542 = vmatmul.msk.f32.gmra.mxu1 %vm105_vm0, %v90_v19 }
  0x91   :  { %v147_v30 = vpop.f32.mrf.mxu0 }
  0x92   :  { %v148_v31 = vadd.f32 %v147_v30, %v2100_v29  ;;  %v165_v32 = vpop.f32.mrf.mxu1 }
  0x93   :  { %v2104_v33 = vadd.f32 %v165_v32, %v2100_v29 }
  0x94   :  { %v1559_v34 = vmul.f32 -1.442695, %v148_v31 }
  0x95   :  { %2613 = vst [vmem:[#allocation29_spill] sm:$0xff] %v2104_v33 }
  0x96   :  { %1748 = vpow2.f32 %v1559_v34 }
  0x98   :  { %v168_v36 = vpop.f32.mrf.mxu2 }
  0x99   :  { %v2109_v37 = vadd.f32 %v168_v36, %v2100_v29  ;;  %v150_v39 = vpop.f32.mrf.mxu0 }
  0x9a   :  { %v188_v38 = vpop.f32.mrf.mxu1  ;;  %v2113_v42 = vadd.f32 %v150_v39, %v2100_v29 }
  0x9b   :  { %2614 = vst [vmem:[#allocation30_spill] sm:$0xff] %v2109_v37  ;;  %v189_v40 = vadd.f32 %v188_v38, %v2106_v35  ;;  %v270_v41 = vpop.f32.mrf.mxu3 }
  0x9c   :  { %v1749_v43 = vpop.eup %1748  ;;  %v271_v25 = vadd.f32 %v270_v41, %v2118_v49 }
  0x9d   :  { %v339_v44 = vadd.f32 1.0, %v1749_v43  ;;  %v1560_v45 = vmul.f32 -1.442695, %v189_v40 }
  0x9f   :  { %1750 = vrcp.f32 %v339_v44  ;;  %vm347_vm1 = vweird.f32 %v339_v44  ;;  %v351_v26 = vand.u32 2147483647, %v339_v44  ;;  %v353_v27 = vand.u32 2147483648, %v339_v44 }
  0xa0   :  { %1752 = vpow2.f32 %v1560_v45  ;;  %v229_v47 = vpop.f32.mrf.mxu2 }
  0xa1   :  { %v230_v48 = vadd.f32 %v229_v47, %v2115_v46  ;;  %v153_v51 = vpop.f32.mrf.mxu0  ;;  %vm2152_vm5 = vcmp.eq.f32.partialorder %v351_v26, 8.507059e+37  ;;  %v354_v40 = vor.u32 1.1754944e-38, %v353_v27 }
  0xa2   :  { %v191_v50 = vpop.f32.mrf.mxu1  ;;  %v2124_v55 = vadd.f32 %v153_v51, %v2100_v29 }
  0xa3   :  { %v1561_v52 = vmul.f32 -1.442695, %v230_v48  ;;  %v2121_v53 = vadd.f32 %v191_v50, %v2106_v35  ;;  %v273_v54 = vpop.f32.mrf.mxu3 }
  0xa4   :  { %v2127_v56 = vadd.f32 %v273_v54, %v2118_v49 }
  0xa5   :  { %v1751_v57 = vpop.eup %1750  ;;  %1754 = vpow2.f32 %v1561_v52 }
  0xa6   :  { %v1753_v58 = vpop.eup %1752  ;;  %v343_v59 = vmul.f32 %v1751_v57, %v339_v44  ;;  %vm348_vm2 = vweird.f32 %v1751_v57 }
  0xa7   :  { %v340_v60 = vadd.f32 1.0, %v1753_v58  ;;  %vm2145_vm3 = vmor %vm347_vm1, %vm348_vm2 }
  0xa8   :  { %v344_v61 = vsub.f32 1.0, %v343_v59  ;;  %v232_v62 = vpop.f32.mrf.mxu2 }
  0xa9   :  { %1756 = vrcp.f32 %v340_v60  ;;  %v2130_v63 = vadd.f32 %v232_v62, %v2115_v46  ;;  %v156_v17 = vpop.f32.mrf.mxu0  ;;  %vm362_vm4 = vweird.f32 %v340_v60  ;;  %v368_v44 = vand.u32 2147483648, %v340_v60 }
  0xaa   :  { %v194_v16 = vpop.f32.mrf.mxu1  ;;  %v2136_v21 = vadd.f32 %v156_v17, %v2100_v29  ;;  %v345_v23 = vmul.f32 %v1751_v57, %v344_v61  ;;  %v366_v45 = vand.u32 2147483647, %v340_v60 }
  0xab   :  { %v1755_v18 = vpop.eup %1754  ;;  %v2133_v19 = vadd.f32 %v194_v16, %v2106_v35  ;;  %v276_v20 = vpop.f32.mrf.mxu3  ;;  %v369_v16 = vor.u32 1.1754944e-38, %v368_v44 }
  0xac   :  { %v2138_v22 = vadd.f32 1.0, %v1755_v18  ;;  %v2141_v24 = vadd.f32 %v276_v20, %v2118_v49  ;;  %v346_v31 = vadd.f32 %v1751_v57, %v345_v23  ;;  %vm367_vm8 = vcmp.eq.f32.partialorder %v366_v45, 8.507059e+37 }
  0xae   :  { %1758 = vrcp.f32 %v2138_v22  ;;  %v350_v54 = vsel %vm2145_vm3, %v1751_v57, %v346_v31  ;;  %vm377_vm10 = vweird.f32 %v2138_v22 }
  0xaf   :  { %v1757_v28 = vpop.eup %1756  ;;  %1760 = vtanh.f32 %v271_v25  ;;  %v355_v18 = vsel %vm2152_vm5, %v354_v40, %v350_v54 }
  0xb0   :  { %v358_v30 = vmul.f32 %v1757_v28, %v340_v60  ;;  %v235_v32 = vpop.f32.mrf.mxu2  ;;  %vm363_vm6 = vweird.f32 %v1757_v28 }
  0xb1   :  { %v2150_v36 = vadd.f32 %v235_v32, %v2115_v46  ;;  %v159_v43 = vpop.f32.mrf.mxu0  ;;  %vm364_vm7 = vmor %vm362_vm4, %vm363_vm6 }
  0xb2   :  { %v359_v38 = vsub.f32 1.0, %v358_v30  ;;  %v197_v41 = vpop.f32.mrf.mxu1  ;;  %v2160_v50 = vadd.f32 %v159_v43, %v2100_v29  ;;  %v381_v43 = vand.u32 2147483647, %v2138_v22 }
  0xb3   :  { %v2157_v47 = vadd.f32 %v197_v41, %v2106_v35  ;;  %v279_v48 = vpop.f32.mrf.mxu3  ;;  %v383_v41 = vand.u32 2147483648, %v2138_v22 }
  0xb4   :  { %2619 = vst [vmem:[#allocation31_spill] sm:$0xff] %v2160_v50  ;;  %v1759_v51 = vpop.eup %1758  ;;  %v360_v52 = vmul.f32 %v1757_v28, %v359_v38  ;;  %v2165_v58 = vadd.f32 %v279_v48, %v2118_v49  ;;  %vm382_vm12 = vcmp.eq.f32.partialorder %v381_v43, 8.507059e+37 }
  0xb5   :  { %v373_v59 = vmul.f32 %v1759_v51, %v2138_v22  ;;  %v1761_v62 = vpop.eup %1760  ;;  %vm378_vm9 = vweird.f32 %v1759_v51  ;;  %v384_v48 = vor.u32 1.1754944e-38, %v383_v41 }
  0xb6   :  { %2620 = vst [vmem:[#allocation32_spill] sm:$0xff] %v2165_v58  ;;  %v361_v61 = vadd.f32 %v1757_v28, %v360_v52  ;;  %v389_v30 = vmul.f32 %v1761_v62, %v355_v18  ;;  %vm379_vm11 = vmor %vm377_vm10, %vm378_vm9 }
  0xb7   :  { %v374_v17 = vsub.f32 1.0, %v373_v59 }
  0xb8   :  { %v365_v20 = vsel %vm364_vm7, %v1757_v28, %v361_v61  ;;  %v238_v23 = vpop.f32.mrf.mxu2 }
  0xb9   :  { %v375_v25 = vmul.f32 %v1759_v51, %v374_v17  ;;  %v370_v57 = vsel %vm367_vm8, %v369_v16, %v365_v20  ;;  %v2172_v26 = vadd.f32 %v238_v23, %v2115_v46  ;;  %v162_v32 = vpop.f32.mrf.mxu0 }
  0xba   :  { %v388_v27 = vmul.f32 0.0, %v370_v57  ;;  %v200_v31 = vpop.f32.mrf.mxu1  ;;  %v2178_v39 = vadd.f32 %v162_v32, %v2100_v29 }
  0xbb   :  { %2621 = vst [vmem:[#allocation33_spill] sm:$0xff] %v2172_v26  ;;  %v2175_v34 = vadd.f32 %v200_v31, %v2106_v35  ;;  %v282_v38 = vpop.f32.mrf.mxu3  ;;  %v376_v40 = vadd.f32 %v1759_v51, %v375_v25 }
  0xbc   :  { %2623 = vst [vmem:[#allocation35_spill] sm:$0xff] %v2178_v39  ;;  %v2180_v60 = vadd.f32 %v389_v30, %v388_v27  ;;  %v2183_v28 = vadd.f32 %v282_v38, %v2118_v49 }
  0xbd   :  { %2622 = vst [vmem:[#allocation34_spill] sm:$0xff] %v2175_v34  ;;  %v380_v45 = vsel %vm379_vm11, %v1759_v51, %v376_v40 }
  0xbe   :  { %2624 = vst [vmem:[#allocation36_spill] sm:$0xff] %v2183_v28  ;;  %1762 = vtanh.f32 %v2180_v60  ;;  %v385_v62 = vsel %vm382_vm12, %v384_v48, %v380_v45 }
  0xc0   :  { %v241_v44 = vpop.f32.mrf.mxu2 }
  0xc1   :  { %v2190_v29 = vadd.f32 %v241_v44, %v2115_v46 }
  0xc2   :  { %v203_v52 = vpop.f32.mrf.mxu1 }
  0xc3   :  { %2625 = vst [vmem:[#allocation37_spill] sm:$0xff] %v2190_v29  ;;  %v2193_v54 = vadd.f32 %v203_v52, %v2106_v35  ;;  %v285_v59 = vpop.f32.mrf.mxu3 }
  0xc4   :  { %v1763_v61 = vpop.eup %1762  ;;  %v2196_v16 = vadd.f32 %v285_v59, %v2118_v49 }
  0xc5   :  { %2626 = vst [vmem:[#allocation38_spill] sm:$0xff] %v2193_v54  ;;  %v2198_v17 = vmul.f32 %v1763_v61, %v385_v62 }
  0xc6   :  { %2627 = vst [vmem:[#allocation39_spill] sm:$0xff] %v2196_v16 }
  0xc8   :  { %v244_v22 = vpop.f32.mrf.mxu2 }
  0xc9   :  { %v2201_v51 = vadd.f32 %v244_v22, %v2115_v46 }
  0xca   :  { %v206_v18 = vpop.f32.mrf.mxu1 }
  0xcb   :  { %2628 = vst [vmem:[#allocation40_spill] sm:$0xff] %v2201_v51  ;;  %v2204_v20 = vadd.f32 %v206_v18, %v2106_v35  ;;  %v288_v23 = vpop.f32.mrf.mxu3 }
  0xcc   :  { %v2207_v25 = vadd.f32 %v288_v23, %v2118_v49 }
  0xcd   :  { %2629 = vst [vmem:[#allocation41_spill] sm:$0xff] %v2204_v20 }
  0xce   :  { %2630 = vst [vmem:[#allocation42_spill] sm:$0xff] %v2207_v25 }
  0xd0   :  { %v247_v57 = vpop.f32.mrf.mxu2 }
  0xd1   :  { %v2210_v27 = vadd.f32 %v247_v57, %v2115_v46 }
  0xd2   :  { %v209_v30 = vpop.f32.mrf.mxu1 }
  0xd3   :  { %2631 = vst [vmem:[#allocation43_spill] sm:$0xff] %v2210_v27  ;;  %v2213_v31 = vadd.f32 %v209_v30, %v2106_v35  ;;  %v291_v32 = vpop.f32.mrf.mxu3 }
  0xd4   :  { %v2216_v38 = vadd.f32 %v291_v32, %v2118_v49 }
  0xd5   :  { %2632 = vst [vmem:[#allocation44_spill] sm:$0xff] %v2213_v31 }
  0xd6   :  { %2633 = vst [vmem:[#allocation45_spill] sm:$0xff] %v2216_v38 }
  0xd8   :  { %v250_v40 = vpop.f32.mrf.mxu2 }
  0xd9   :  { %v2219_v41 = vadd.f32 %v250_v40, %v2115_v46 }
  0xdb   :  { %2634 = vst [vmem:[#allocation46_spill] sm:$0xff] %v2219_v41 }
  0xdc   :  { %1901 = dma.done.wait [#allocation5], 4096 }
  0xdd   :  { %1902 = vsyncadd [#allocation5], 4294963200  ;;  %v1676_v43 = vld [vmem:[#allocation3 + $0xe0] sm:$0xf]  ;;  %v1743_v44 = vld [vmem:[#allocation3 + $0xec] sm:$0xf0] }
  0xde   :  { %v1741_v45 = vld [vmem:[#allocation3 + $0xe4] sm:$0xf]  ;;  %v2221_v48 = vor.u32 %v1743_v44, %v1676_v43  ;;  %v1678_v52 = vld [vmem:[#allocation3 + $0xf0] sm:$0xf0]  ;;  %v1684_v59 = vld [vmem:[#allocation3 + $0xe8] sm:$0xf] }
  0xdf   :  { %v1744_v61 = vld [vmem:[#allocation3 + $0xf4] sm:$0xf0]  ;;  %v2223_v35 = vor.u32 %v1741_v45, %v1678_v52  ;;  %v1660_v49 = vld [vmem:[#allocation3 + $0xc0] sm:$0xf]  ;;  %v1739_v22 = vld [vmem:[#allocation3 + $0xcc] sm:$0xf0] }
  0xe0   :  { %v2225_v62 = vor.u32 %v1744_v61, %v1684_v59  ;;  %v1737_v18 = vld [vmem:[#allocation3 + $0xc4] sm:$0xf]  ;;  %594 = vmatpush.bf16.msrb.mxu0 %v2221_v48  ;;  %v2228_v46 = vor.u32 %v1739_v22, %v1660_v49  ;;  %v1662_v23 = vld [vmem:[#allocation3 + $0xd0] sm:$0xf0]  ;;  %v1668_v57 = vld [vmem:[#allocation3 + $0xc8] sm:$0xf] }
  0xe1   :  { %v1740_v30 = vld [vmem:[#allocation3 + $0xd4] sm:$0xf0]  ;;  %607 = vmatpush.bf16.msra.mxu1 %v2223_v35  ;;  %v2232_v32 = vor.u32 %v1737_v18, %v1662_v23  ;;  %v1742_v43 = vld [vmem:[#allocation3 + $0xec] sm:$0xf]  ;;  %v1686_v44 = vld [vmem:[#allocation3 + $0xf8] sm:$0xf0] }
  0xe2   :  { %620 = vmatpush.bf16.msra.mxu2 %v2225_v62  ;;  %v2234_v40 = vor.u32 %v1740_v30, %v1668_v57  ;;  %v1644_v45 = vld [vmem:[#allocation3 + $0xa0] sm:$0xf]  ;;  %v2236_v52 = vor.u32 %v1742_v43, %v1686_v44  ;;  %v1735_v59 = vld [vmem:[#allocation3 + $0xac] sm:$0xf0]  ;;  %v1733_v61 = vld [vmem:[#allocation3 + $0xa4] sm:$0xf] }
  0xe3   :  { %v1646_v49 = vld [vmem:[#allocation3 + $0xb0] sm:$0xf0]  ;;  %v1652_v22 = vld [vmem:[#allocation3 + $0xa8] sm:$0xf]  ;;  %v1736_v0 = vld [vmem:[#allocation3 + $0xb4] sm:$0xf0]  ;;  %v2240_v2 = vor.u32 %v1735_v59, %v1644_v45 }
  0xe4   :  { %v1738_v1 = vld [vmem:[#allocation3 + $0xcc] sm:$0xf]  ;;  %595 = vmatpush.bf16.msrb.mxu0 %v2228_v46  ;;  %633 = vmatpush.bf16.msrb.mxu3 %v2236_v52  ;;  %v1670_v18 = vld [vmem:[#allocation3 + $0xd8] sm:$0xf0]  ;;  %v1628_v23 = vld [vmem:[#allocation3 + $0x80] sm:$0xf]  ;;  %v2244_v30 = vor.u32 %v1733_v61, %v1646_v49  ;;  %v2246_v43 = vor.u32 %v1736_v0, %v1652_v22 }
  0xe5   :  { %v1731_v57 = vld [vmem:[#allocation3 + $0x8c] sm:$0xf0]  ;;  %608 = vmatpush.bf16.msra.mxu1 %v2232_v32  ;;  %v2248_v44 = vor.u32 %v1738_v1, %v1670_v18  ;;  %v1729_v3 = vld [vmem:[#allocation3 + $0x84] sm:$0xf]  ;;  %v1630_v4 = vld [vmem:[#allocation3 + $0x90] sm:$0xf0] }
  0xe6   :  { %621 = vmatpush.bf16.msra.mxu2 %v2234_v40  ;;  %v1636_v5 = vld [vmem:[#allocation3 + $0x88] sm:$0xf]  ;;  %v1732_v6 = vld [vmem:[#allocation3 + $0x94] sm:$0xf0]  ;;  %v1734_v7 = vld [vmem:[#allocation3 + $0xac] sm:$0xf]  ;;  %v2252_v59 = vor.u32 %v1731_v57, %v1628_v23  ;;  %v2258_v0 = vor.u32 %v1729_v3, %v1630_v4 }
  0xe7   :  { %v1654_v45 = vld [vmem:[#allocation3 + $0xb8] sm:$0xf0]  ;;  %v1612_v61 = vld [vmem:[#allocation3 + $0x60] sm:$0xf]  ;;  %v1727_v49 = vld [vmem:[#allocation3 + $0x6c] sm:$0xf0]  ;;  %v2260_v1 = vor.u32 %v1732_v6, %v1636_v5 }
  0xe8   :  { %596 = vmatpush.bf16.msrb.mxu0 %v2240_v2  ;;  %634 = vmatpush.bf16.msrb.mxu3 %v2248_v44  ;;  %v2254_v8 = vor.u32 %v1734_v7, %v1654_v45  ;;  %v1725_v22 = vld [vmem:[#allocation3 + $0x64] sm:$0xf]  ;;  %v1730_v18 = vld [vmem:[#allocation3 + $0x8c] sm:$0xf]  ;;  %v1638_v9 = vld [vmem:[#allocation3 + $0x98] sm:$0xf0]  ;;  %v2264_v7 = vor.u32 %v1727_v49, %v1612_v61 }
  0xe9   :  { %609 = vmatpush.bf16.msra.mxu1 %v2244_v30  ;;  %v1614_v10 = vld [vmem:[#allocation3 + $0x70] sm:$0xf0]  ;;  %v1620_v11 = vld [vmem:[#allocation3 + $0x68] sm:$0xf]  ;;  %v1728_v12 = vld [vmem:[#allocation3 + $0x74] sm:$0xf0]  ;;  %v2266_v23 = vor.u32 %v1730_v18, %v1638_v9 }
  0xea   :  { %622 = vmatpush.bf16.msra.mxu2 %v2246_v43  ;;  %v1596_v57 = vld [vmem:[#allocation3 + $0x40] sm:$0xf]  ;;  %v1723_v45 = vld [vmem:[#allocation3 + $0x4c] sm:$0xf0]  ;;  %v2270_v3 = vor.u32 %v1725_v22, %v1614_v10  ;;  %v2272_v4 = vor.u32 %v1728_v12, %v1620_v11  ;;  %v1721_v5 = vld [vmem:[#allocation3 + $0x44] sm:$0xf] }
  0xeb   :  { %v1726_v6 = vld [vmem:[#allocation3 + $0x6c] sm:$0xf]  ;;  %v1622_v13 = vld [vmem:[#allocation3 + $0x78] sm:$0xf0]  ;;  %v1598_v14 = vld [vmem:[#allocation3 + $0x50] sm:$0xf0]  ;;  %v2276_v9 = vor.u32 %v1723_v45, %v1596_v57 }
  0xec   :  { %597 = vmatpush.bf16.msrb.mxu0 %v2252_v59  ;;  %635 = vmatpush.bf16.msrb.mxu3 %v2254_v8  ;;  %v1604_v15 = vld [vmem:[#allocation3 + $0x48] sm:$0xf]  ;;  %v1724_v38 = vld [vmem:[#allocation3 + $0x54] sm:$0xf0]  ;;  %v2278_v61 = vor.u32 %v1726_v6, %v1622_v13  ;;  %v1580_v49 = vld [vmem:[#allocation3 + $0x20] sm:$0xf]  ;;  %v2282_v10 = vor.u32 %v1721_v5, %v1598_v14 }
  0xed   :  { %610 = vmatpush.bf16.msra.mxu1 %v2258_v0  ;;  %v1719_v18 = vld [vmem:[#allocation3 + $0x2c] sm:$0xf0]  ;;  %v2284_v11 = vor.u32 %v1724_v38, %v1604_v15  ;;  %v1717_v12 = vld [vmem:[#allocation3 + $0x24] sm:$0xf]  ;;  %v1722_v22 = vld [vmem:[#allocation3 + $0x4c] sm:$0xf] }
  0xee   :  { %623 = vmatpush.bf16.msra.mxu2 %v2260_v1  ;;  %v1606_v41 = vld [vmem:[#allocation3 + $0x58] sm:$0xf0]  ;;  %v1582_v31 = vld [vmem:[#allocation3 + $0x30] sm:$0xf0]  ;;  %v1588_v37 = vld [vmem:[#allocation3 + $0x28] sm:$0xf]  ;;  %v2288_v13 = vor.u32 %v1719_v18, %v1580_v49 }
  0xef   :  { %v1720_v25 = vld [vmem:[#allocation3 + $0x34] sm:$0xf0]  ;;  %v2290_v57 = vor.u32 %v1722_v22, %v1606_v41  ;;  %v1564_v45 = vld [vmem:[#allocation3] sm:$0xf]  ;;  %v1715_v6 = vld [vmem:[#allocation3 + $0xc] sm:$0xf0]  ;;  %v2294_v14 = vor.u32 %v1717_v12, %v1582_v31  ;;  %v433_v12 = vpack.c.bf16 %v2198_v17, %v2198_v17 }
  0xf0   :  { %598 = vmatpush.bf16.msrb.mxu0 %v2264_v7  ;;  %636 = vmatpush.bf16.msrb.mxu3 %v2266_v23  ;;  %v2296_v15 = vor.u32 %v1720_v25, %v1588_v37  ;;  %v1713_v38 = vld [vmem:[#allocation3 + $0x4] sm:$0xf]  ;;  %v1718_v5 = vld [vmem:[#allocation3 + $0x2c] sm:$0xf]  ;;  %v1590_v27 = vld [vmem:[#allocation3 + $0x38] sm:$0xf0]  ;;  %v2300_v41 = vor.u32 %v1715_v6, %v1564_v45 }
  0xf1   :  { %611 = vmatpush.bf16.msra.mxu1 %v2270_v3  ;;  %v1566_v20 = vld [vmem:[#allocation3 + $0x10] sm:$0xf0]  ;;  %v1572_v33 = vld [vmem:[#allocation3 + $0x8] sm:$0xf]  ;;  %v1716_v16 = vld [vmem:[#allocation3 + $0x14] sm:$0xf0]  ;;  %v2302_v49 = vor.u32 %v1718_v5, %v1590_v27 }
  0xf2   :  { %624 = vmatpush.bf16.msra.mxu2 %v2272_v4  ;;  %v2306_v37 = vor.u32 %v1713_v38, %v1566_v20  ;;  %v2308_v25 = vor.u32 %v1716_v16, %v1572_v33  ;;  %v1714_v31 = vld [vmem:[#allocation3 + $0xc] sm:$0xf]  ;;  %v1574_v18 = vld [vmem:[#allocation3 + $0x18] sm:$0xf0] }
  0xf3   :  { %v2316_v27 = vor.u32 %v1714_v31, %v1574_v18 }
  0xf4   :  { %599 = vmatpush.bf16.msrb.mxu0 %v2276_v9  ;;  %637 = vmatpush.bf16.msrb.mxu3 %v2278_v61 }
  0xf5   :  { %612 = vmatpush.bf16.msra.mxu1 %v2282_v10 }
  0xf6   :  { %625 = vmatpush.bf16.msra.mxu2 %v2284_v11 }
  0xf8   :  { %600 = vmatpush.bf16.msrb.mxu0 %v2288_v13  ;;  %638 = vmatpush.bf16.msrb.mxu3 %v2290_v57 }
  0xf9   :  { %613 = vmatpush.bf16.msra.mxu1 %v2294_v14 }
  0xfa   :  { %626 = vmatpush.bf16.msra.mxu2 %v2296_v15 }
  0xfc   :  { %601 = vmatpush.bf16.msrb.mxu0 %v2300_v41  ;;  %639 = vmatpush.bf16.msrb.mxu3 %v2302_v49 }
  0xfd   :  { %614 = vmatpush.bf16.msra.mxu1 %v2306_v37 }
  0xfe   :  { %627 = vmatpush.bf16.msra.mxu2 %v2308_v25 }
  0xff   :  { %602 = vmatmul.bf16.vlgmr.msrb.gmra.mxu0 %v433_v12 }
 0x100   :  { %718 = vmatpush.bf16.msra.mxu0 %v2221_v48  ;;  %615 = vmatmul.bf16.vlgmr.msra.gmra.mxu1 %v433_v12 }
 0x101   :  { %731 = vmatpush.bf16.msrb.mxu1 %v2223_v35  ;;  %628 = vmatmul.bf16.vlgmr.msra.gmra.mxu2 %v433_v12 }
 0x102   :  { %744 = vmatpush.bf16.msrb.mxu2 %v2225_v62  ;;  %640 = vmatpush.bf16.msrb.mxu3 %v2316_v27 }
 0x104   :  { %719 = vmatpush.bf16.msra.mxu0 %v2228_v46 }
 0x105   :  { %732 = vmatpush.bf16.msrb.mxu1 %v2232_v32  ;;  %641 = vmatmul.bf16.vlgmr.msrb.gmra.mxu3 %v433_v12 }
 0x106   :  { %757 = vmatpush.bf16.msra.mxu3 %v2236_v52  ;;  %745 = vmatpush.bf16.msrb.mxu2 %v2234_v40 }
 0x108   :  { %720 = vmatpush.bf16.msra.mxu0 %v2240_v2 }
 0x109   :  { %733 = vmatpush.bf16.msrb.mxu1 %v2244_v30 }
 0x10a   :  { %758 = vmatpush.bf16.msra.mxu3 %v2248_v44  ;;  %746 = vmatpush.bf16.msrb.mxu2 %v2246_v43 }
 0x10c   :  { %721 = vmatpush.bf16.msra.mxu0 %v2252_v59 }
 0x10d   :  { %734 = vmatpush.bf16.msrb.mxu1 %v2258_v0 }
 0x10e   :  { %759 = vmatpush.bf16.msra.mxu3 %v2254_v8  ;;  %747 = vmatpush.bf16.msrb.mxu2 %v2260_v1 }
 0x110   :  { %722 = vmatpush.bf16.msra.mxu0 %v2264_v7 }
 0x111   :  { %735 = vmatpush.bf16.msrb.mxu1 %v2270_v3 }
 0x112   :  { %760 = vmatpush.bf16.msra.mxu3 %v2266_v23  ;;  %748 = vmatpush.bf16.msrb.mxu2 %v2272_v4 }
 0x114   :  { %723 = vmatpush.bf16.msra.mxu0 %v2276_v9 }
 0x115   :  { %736 = vmatpush.bf16.msrb.mxu1 %v2282_v10 }
 0x116   :  { %761 = vmatpush.bf16.msra.mxu3 %v2278_v61  ;;  %749 = vmatpush.bf16.msrb.mxu2 %v2284_v11 }
 0x118   :  { %724 = vmatpush.bf16.msra.mxu0 %v2288_v13 }
 0x119   :  { %737 = vmatpush.bf16.msrb.mxu1 %v2294_v14 }
 0x11a   :  { %762 = vmatpush.bf16.msra.mxu3 %v2290_v57  ;;  %750 = vmatpush.bf16.msrb.mxu2 %v2296_v15 }
 0x11c   :  { %725 = vmatpush.bf16.msra.mxu0 %v2300_v41 }
 0x11d   :  { %738 = vmatpush.bf16.msrb.mxu1 %v2306_v37 }
 0x11e   :  { %763 = vmatpush.bf16.msra.mxu3 %v2302_v49  ;;  %751 = vmatpush.bf16.msrb.mxu2 %v2308_v25 }
 0x120   :  { %842 = vmatpush.bf16.msrb.mxu0 %v2221_v48 }
 0x121   :  { %855 = vmatpush.bf16.msra.mxu1 %v2223_v35 }
 0x122   :  { %868 = vmatpush.bf16.msra.mxu2 %v2225_v62  ;;  %764 = vmatpush.bf16.msra.mxu3 %v2316_v27 }
 0x124   :  { %843 = vmatpush.bf16.msrb.mxu0 %v2228_v46 }
 0x125   :  { %856 = vmatpush.bf16.msra.mxu1 %v2232_v32 }
 0x126   :  { %881 = vmatpush.bf16.msrb.mxu3 %v2236_v52  ;;  %869 = vmatpush.bf16.msra.mxu2 %v2234_v40 }
 0x128   :  { %844 = vmatpush.bf16.msrb.mxu0 %v2240_v2 }
 0x129   :  { %857 = vmatpush.bf16.msra.mxu1 %v2244_v30 }
 0x12a   :  { %882 = vmatpush.bf16.msrb.mxu3 %v2248_v44  ;;  %870 = vmatpush.bf16.msra.mxu2 %v2246_v43 }
 0x12c   :  { %845 = vmatpush.bf16.msrb.mxu0 %v2252_v59 }
 0x12d   :  { %858 = vmatpush.bf16.msra.mxu1 %v2258_v0 }
 0x12e   :  { %883 = vmatpush.bf16.msrb.mxu3 %v2254_v8  ;;  %871 = vmatpush.bf16.msra.mxu2 %v2260_v1 }
 0x130   :  { %846 = vmatpush.bf16.msrb.mxu0 %v2264_v7 }
 0x131   :  { %859 = vmatpush.bf16.msra.mxu1 %v2270_v3 }
 0x132   :  { %884 = vmatpush.bf16.msrb.mxu3 %v2266_v23  ;;  %872 = vmatpush.bf16.msra.mxu2 %v2272_v4 }
 0x134   :  { %847 = vmatpush.bf16.msrb.mxu0 %v2276_v9 }
 0x135   :  { %860 = vmatpush.bf16.msra.mxu1 %v2282_v10 }
 0x136   :  { %885 = vmatpush.bf16.msrb.mxu3 %v2278_v61  ;;  %873 = vmatpush.bf16.msra.mxu2 %v2284_v11 }
 0x138   :  { %848 = vmatpush.bf16.msrb.mxu0 %v2288_v13 }
 0x139   :  { %861 = vmatpush.bf16.msra.mxu1 %v2294_v14 }
 0x13a   :  { %886 = vmatpush.bf16.msrb.mxu3 %v2290_v57  ;;  %874 = vmatpush.bf16.msra.mxu2 %v2296_v15 }
 0x13c   :  { %849 = vmatpush.bf16.msrb.mxu0 %v2300_v41 }
 0x13d   :  { %862 = vmatpush.bf16.msra.mxu1 %v2306_v37 }
 0x13e   :  { %887 = vmatpush.bf16.msrb.mxu3 %v2302_v49  ;;  %875 = vmatpush.bf16.msra.mxu2 %v2308_v25 }
 0x142   :  { %888 = vmatpush.bf16.msrb.mxu3 %v2316_v27 }
 0x17c   :  { %v603_v33 = vpop.f32.mrf.mxu0 }
 0x17d   :  { %v646_v16 = vadd.f32 %v603_v33, %v2113_v42  ;;  %v616_v17 = vpop.f32.mrf.mxu1 }
 0x17e   :  { %v647_v20 = vadd.f32 %v616_v17, %v2121_v53 }
 0x17f   :  { %v1690_v22 = vmul.f32 -1.442695, %v646_v16 }
 0x180   :  { %v1691_v45 = vmul.f32 -1.442695, %v647_v20 }
 0x181   :  { %1764 = vpow2.f32 %v1690_v22 }
 0x182   :  { %1766 = vpow2.f32 %v1691_v45 }
 0x184   :  { %v629_v6 = vpop.f32.mrf.mxu2  ;;  %v605_v5 = vpop.f32.mrf.mxu0 }
 0x185   :  { %v648_v38 = vadd.f32 %v629_v6, %v2130_v63  ;;  %v618_v31 = vpop.f32.mrf.mxu1 }
 0x187   :  { %v1692_v18 = vmul.f32 -1.442695, %v648_v38  ;;  %v1765_v12 = vpop.eup %1764 }
 0x188   :  { %v642_v51 = vpop.f32.mrf.mxu3  ;;  %v1767_v54 = vpop.eup %1766  ;;  %v659_v39 = vadd.f32 1.0, %v1765_v12 }
 0x189   :  { %1768 = vpow2.f32 %v1692_v18  ;;  %v660_v28 = vadd.f32 1.0, %v1767_v54  ;;  %v649_v33 = vadd.f32 %v642_v51, %v2127_v56 }
 0x18a   :  { %1770 = vrcp.f32 %v659_v39  ;;  %v673_v5 = vand.u32 2147483648, %v659_v39  ;;  %v671_v54 = vand.u32 2147483647, %v659_v39  ;;  %vm667_vm15 = vweird.f32 %v659_v39 }
 0x18b   :  { %1772 = vrcp.f32 %v660_v28  ;;  %v688_v31 = vand.u32 2147483648, %v660_v28  ;;  %vm682_vm0 = vweird.f32 %v660_v28 }
 0x18c   :  { %v631_v42 = vpop.f32.mrf.mxu2  ;;  %vm672_vm2 = vcmp.eq.f32.partialorder %v671_v54, 8.507059e+37 }
 0x18d   :  { %v686_v42 = vand.u32 2147483647, %v660_v28 }
 0x18f   :  { %v1769_v53 = vpop.eup %1768  ;;  %vm687_vm4 = vcmp.eq.f32.partialorder %v686_v42, 8.507059e+37 }
 0x190   :  { %v661_v16 = vadd.f32 1.0, %v1769_v53  ;;  %v644_v17 = vpop.f32.mrf.mxu3  ;;  %v1771_v20 = vpop.eup %1770 }
 0x191   :  { %v1773_v22 = vpop.eup %1772  ;;  %v663_v63 = vmul.f32 %v1771_v20, %v659_v39  ;;  %vm668_vm13 = vweird.f32 %v1771_v20  ;;  %v674_v17 = vor.u32 1.1754944e-38, %v673_v5 }
 0x192   :  { %1774 = vrcp.f32 %v661_v16  ;;  %v678_v45 = vmul.f32 %v1773_v22, %v660_v28  ;;  %vm683_vm14 = vweird.f32 %v1773_v22  ;;  %vm669_vm1 = vmor %vm667_vm15, %vm668_vm13  ;;  %v703_v5 = vand.u32 2147483648, %v661_v16 }
 0x193   :  { %1776 = vtanh.f32 %v649_v33  ;;  %v664_v6 = vsub.f32 1.0, %v663_v63  ;;  %v689_v33 = vor.u32 1.1754944e-38, %v688_v31  ;;  %vm684_vm3 = vmor %vm682_vm0, %vm683_vm14  ;;  %vm697_vm6 = vweird.f32 %v661_v16 }
 0x194   :  { %v679_v38 = vsub.f32 1.0, %v678_v45  ;;  %v704_v54 = vor.u32 1.1754944e-38, %v703_v5 }
 0x195   :  { %v665_v18 = vmul.f32 %v1771_v20, %v664_v6 }
 0x196   :  { %v680_v12 = vmul.f32 %v1773_v22, %v679_v38 }
 0x197   :  { %v666_v56 = vadd.f32 %v1771_v20, %v665_v18 }
 0x198   :  { %v1775_v29 = vpop.eup %1774  ;;  %v681_v34 = vadd.f32 %v1773_v22, %v680_v12 }
 0x199   :  { %v1777_v51 = vpop.eup %1776  ;;  %v693_v53 = vmul.f32 %v1775_v29, %v661_v16  ;;  %v670_v63 = vsel %vm669_vm1, %v1771_v20, %v666_v56  ;;  %vm698_vm5 = vweird.f32 %v1775_v29  ;;  %v701_v20 = vand.u32 2147483647, %v661_v16 }
 0x19a   :  { %v675_v6 = vsel %vm672_vm2, %v674_v17, %v670_v63  ;;  %v685_v50 = vsel %vm684_vm3, %v1773_v22, %v681_v34  ;;  %vm699_vm7 = vmor %vm697_vm6, %vm698_vm5 }
 0x19b   :  { %v694_v45 = vsub.f32 1.0, %v693_v53  ;;  %v690_v38 = vsel %vm687_vm4, %v689_v33, %v685_v50  ;;  %v709_v58 = vmul.f32 %v1777_v51, %v675_v6  ;;  %vm702_vm8 = vcmp.eq.f32.partialorder %v701_v20, 8.507059e+37 }
 0x19c   :  { %v708_v26 = vmul.f32 %v690_v38, %v2180_v60 }
 0x19d   :  { %v695_v18 = vmul.f32 %v1775_v29, %v694_v45 }
 0x19e   :  { %v2388_v39 = vadd.f32 %v709_v58, %v708_v26 }
 0x19f   :  { %v696_v28 = vadd.f32 %v1775_v29, %v695_v18 }
 0x1a0   :  { %1778 = vtanh.f32 %v2388_v39 }
 0x1a1   :  { %v700_v31 = vsel %vm699_vm7, %v1775_v29, %v696_v28 }
 0x1a2   :  { %v705_v22 = vsel %vm702_vm8, %v704_v54, %v700_v31 }
 0x1a6   :  { %v1779_v34 = vpop.eup %1778 }
 0x1a7   :  { %v712_v50 = vmul.f32 %v1779_v34, %v705_v22 }
 0x1a9   :  { %v717_v12 = vpack.c.bf16 %v712_v50, %v712_v50 }
 0x1ab   :  { %726 = vmatmul.bf16.vlgmr.msra.gmra.mxu0 %v717_v12  ;;  %739 = vmatmul.bf16.vlgmr.msrb.gmra.mxu1 %v717_v12 }
 0x1ac   :  { %752 = vmatmul.bf16.vlgmr.msrb.gmra.mxu2 %v717_v12  ;;  %765 = vmatmul.bf16.vlgmr.msra.gmra.mxu3 %v717_v12 }
 0x1ad   :  { %966 = vmatpush.bf16.msra.mxu0 %v2221_v48  ;;  %979 = vmatpush.bf16.msrb.mxu1 %v2223_v35 }
 0x1ae   :  { %992 = vmatpush.bf16.msrb.mxu2 %v2225_v62  ;;  %1005 = vmatpush.bf16.msra.mxu3 %v2236_v52 }
 0x1b1   :  { %967 = vmatpush.bf16.msra.mxu0 %v2228_v46  ;;  %980 = vmatpush.bf16.msrb.mxu1 %v2232_v32 }
 0x1b2   :  { %993 = vmatpush.bf16.msrb.mxu2 %v2234_v40  ;;  %1006 = vmatpush.bf16.msra.mxu3 %v2248_v44 }
 0x1b5   :  { %968 = vmatpush.bf16.msra.mxu0 %v2240_v2  ;;  %981 = vmatpush.bf16.msrb.mxu1 %v2244_v30 }
 0x1b6   :  { %994 = vmatpush.bf16.msrb.mxu2 %v2246_v43  ;;  %1007 = vmatpush.bf16.msra.mxu3 %v2254_v8 }
 0x1b9   :  { %969 = vmatpush.bf16.msra.mxu0 %v2252_v59  ;;  %982 = vmatpush.bf16.msrb.mxu1 %v2258_v0 }
 0x1ba   :  { %995 = vmatpush.bf16.msrb.mxu2 %v2260_v1  ;;  %1008 = vmatpush.bf16.msra.mxu3 %v2266_v23 }
 0x1bd   :  { %970 = vmatpush.bf16.msra.mxu0 %v2264_v7  ;;  %983 = vmatpush.bf16.msrb.mxu1 %v2270_v3 }
 0x1be   :  { %996 = vmatpush.bf16.msrb.mxu2 %v2272_v4  ;;  %1009 = vmatpush.bf16.msra.mxu3 %v2278_v61 }
 0x1c1   :  { %971 = vmatpush.bf16.msra.mxu0 %v2276_v9  ;;  %984 = vmatpush.bf16.msrb.mxu1 %v2282_v10 }
 0x1c2   :  { %997 = vmatpush.bf16.msrb.mxu2 %v2284_v11  ;;  %1010 = vmatpush.bf16.msra.mxu3 %v2290_v57 }
 0x1c5   :  { %972 = vmatpush.bf16.msra.mxu0 %v2288_v13  ;;  %985 = vmatpush.bf16.msrb.mxu1 %v2294_v14 }
 0x1c6   :  { %998 = vmatpush.bf16.msrb.mxu2 %v2296_v15  ;;  %1011 = vmatpush.bf16.msra.mxu3 %v2302_v49 }
 0x1c9   :  { %973 = vmatpush.bf16.msra.mxu0 %v2300_v41  ;;  %986 = vmatpush.bf16.msrb.mxu1 %v2306_v37 }
 0x1ca   :  { %999 = vmatpush.bf16.msrb.mxu2 %v2308_v25  ;;  %1012 = vmatpush.bf16.msra.mxu3 %v2316_v27 }
 0x228   :  { %v727_v58 = vpop.f32.mrf.mxu0  ;;  %v740_v26 = vpop.f32.mrf.mxu1 }
 0x229   :  { %v770_v60 = vadd.f32 %v727_v58, %v2124_v55  ;;  %v771_v29 = vadd.f32 %v740_v26, %v2133_v19 }
 0x22b   :  { %v1693_v16 = vmul.f32 -1.442695, %v770_v60  ;;  %v1694_v42 = vmul.f32 -1.442695, %v771_v29 }
 0x22d   :  { %1780 = vpow2.f32 %v1693_v16 }
 0x22e   :  { %1782 = vpow2.f32 %v1694_v42 }
 0x22f   :  { %v753_v56 = vpop.f32.mrf.mxu2  ;;  %v766_v51 = vpop.f32.mrf.mxu3 }
 0x230   :  { %v772_v53 = vadd.f32 %v753_v56, %v2150_v36  ;;  %v729_v17 = vpop.f32.mrf.mxu0  ;;  %v742_v33 = vpop.f32.mrf.mxu1  ;;  %v773_v31 = vadd.f32 %v766_v51, %v2141_v24 }
 0x232   :  { %v1695_v63 = vmul.f32 -1.442695, %v772_v53 }
 0x233   :  { %v1781_v45 = vpop.eup %1780 }
 0x234   :  { %v1783_v6 = vpop.eup %1782  ;;  %v783_v38 = vadd.f32 1.0, %v1781_v45  ;;  %1784 = vpow2.f32 %v1695_v63 }
 0x235   :  { %v784_v18 = vadd.f32 1.0, %v1783_v6 }
 0x236   :  { %1786 = vrcp.f32 %v783_v38  ;;  %v797_v12 = vand.u32 2147483648, %v783_v38  ;;  %v795_v60 = vand.u32 2147483647, %v783_v38  ;;  %vm791_vm11 = vweird.f32 %v783_v38 }
 0x237   :  { %1788 = vrcp.f32 %v784_v18  ;;  %v755_v55 = vpop.f32.mrf.mxu2  ;;  %v768_v19 = vpop.f32.mrf.mxu3  ;;  %v812_v58 = vand.u32 2147483648, %v784_v18  ;;  %v810_v16 = vand.u32 2147483647, %v784_v18  ;;  %vm806_vm12 = vweird.f32 %v784_v18 }
 0x238   :  { %v798_v51 = vor.u32 1.1754944e-38, %v797_v12  ;;  %vm796_vm15 = vcmp.eq.f32.partialorder %v795_v60, 8.507059e+37 }
 0x239   :  { %v813_v17 = vor.u32 1.1754944e-38, %v812_v58  ;;  %vm811_vm0 = vcmp.eq.f32.partialorder %v810_v16, 8.507059e+37 }
 0x23a   :  { %v1785_v28 = vpop.eup %1784 }
 0x23b   :  { %v785_v5 = vadd.f32 1.0, %v1785_v28 }
 0x23c   :  { %v1787_v20 = vpop.eup %1786 }
 0x23d   :  { %v1789_v54 = vpop.eup %1788  ;;  %v787_v34 = vmul.f32 %v1787_v20, %v783_v38  ;;  %1790 = vrcp.f32 %v785_v5  ;;  %vm792_vm9 = vweird.f32 %v1787_v20  ;;  %vm821_vm2 = vweird.f32 %v785_v5 }
 0x23e   :  { %v802_v36 = vmul.f32 %v1789_v54, %v784_v18  ;;  %1792 = vtanh.f32 %v773_v31  ;;  %vm807_vm10 = vweird.f32 %v1789_v54  ;;  %vm793_vm13 = vmor %vm791_vm11, %vm792_vm9 }
 0x23f   :  { %v788_v22 = vsub.f32 1.0, %v787_v34  ;;  %vm808_vm14 = vmor %vm806_vm12, %vm807_vm10 }
 0x240   :  { %v803_v50 = vsub.f32 1.0, %v802_v36  ;;  %v827_v36 = vand.u32 2147483648, %v785_v5 }
 0x241   :  { %v789_v26 = vmul.f32 %v1787_v20, %v788_v22 }
 0x242   :  { %v804_v29 = vmul.f32 %v1789_v54, %v803_v50  ;;  %v828_v50 = vor.u32 1.1754944e-38, %v827_v36 }
 0x243   :  { %v1791_v42 = vpop.eup %1790  ;;  %v790_v56 = vadd.f32 %v1787_v20, %v789_v26 }
 0x244   :  { %v817_v24 = vmul.f32 %v1791_v42, %v785_v5  ;;  %v805_v53 = vadd.f32 %v1789_v54, %v804_v29  ;;  %v1793_v63 = vpop.eup %1792  ;;  %vm822_vm1 = vweird.f32 %v1791_v42 }
 0x245   :  { %v794_v33 = vsel %vm793_vm13, %v1787_v20, %v790_v56  ;;  %v825_v20 = vand.u32 2147483647, %v785_v5  ;;  %vm823_vm3 = vmor %vm821_vm2, %vm822_vm1 }
 0x246   :  { %v818_v45 = vsub.f32 1.0, %v817_v24  ;;  %v799_v6 = vsel %vm796_vm15, %v798_v51, %v794_v33  ;;  %v809_v55 = vsel %vm808_vm14, %v1789_v54, %v805_v53  ;;  %v2635_v51 = vld [vmem:[#allocation33_spill] sm:$0xff] }
 0x247   :  { %v814_v19 = vsel %vm811_vm0, %v813_v17, %v809_v55  ;;  %v833_v28 = vmul.f32 %v1793_v63, %v799_v6  ;;  %vm826_vm4 = vcmp.eq.f32.partialorder %v825_v20, 8.507059e+37 }
 0x248   :  { %v832_v31 = vmul.f32 %v814_v19, %v2388_v39  ;;  %v819_v34 = vmul.f32 %v1791_v42, %v818_v45 }
 0x24a   :  { %v2428_v38 = vadd.f32 %v833_v28, %v832_v31  ;;  %v820_v18 = vadd.f32 %v1791_v42, %v819_v34 }
 0x24c   :  { %1794 = vtanh.f32 %v2428_v38  ;;  %v824_v22 = vsel %vm823_vm3, %v1791_v42, %v820_v18  ;;  %v2636_v18 = vld [vmem:[#allocation32_spill] sm:$0xff] }
 0x24d   :  { %v829_v12 = vsel %vm826_vm4, %v828_v50, %v824_v22 }
 0x252   :  { %v1795_v54 = vpop.eup %1794 }
 0x253   :  { %v836_v58 = vmul.f32 %v1795_v54, %v829_v12 }
 0x255   :  { %v841_v26 = vpack.c.bf16 %v836_v58, %v836_v58 }
 0x257   :  { %850 = vmatmul.bf16.vlgmr.msrb.gmra.mxu0 %v841_v26  ;;  %863 = vmatmul.bf16.vlgmr.msra.gmra.mxu1 %v841_v26 }
 0x258   :  { %876 = vmatmul.bf16.vlgmr.msra.gmra.mxu2 %v841_v26  ;;  %889 = vmatmul.bf16.vlgmr.msrb.gmra.mxu3 %v841_v26 }
 0x259   :  { %1090 = vmatpush.bf16.msrb.mxu0 %v2221_v48  ;;  %1103 = vmatpush.bf16.msra.mxu1 %v2223_v35 }
 0x25a   :  { %1116 = vmatpush.bf16.msra.mxu2 %v2225_v62  ;;  %1129 = vmatpush.bf16.msrb.mxu3 %v2236_v52 }
 0x25d   :  { %1091 = vmatpush.bf16.msrb.mxu0 %v2228_v46  ;;  %1104 = vmatpush.bf16.msra.mxu1 %v2232_v32 }
 0x25e   :  { %1117 = vmatpush.bf16.msra.mxu2 %v2234_v40  ;;  %1130 = vmatpush.bf16.msrb.mxu3 %v2248_v44 }
 0x261   :  { %1092 = vmatpush.bf16.msrb.mxu0 %v2240_v2  ;;  %1105 = vmatpush.bf16.msra.mxu1 %v2244_v30 }
 0x262   :  { %1118 = vmatpush.bf16.msra.mxu2 %v2246_v43  ;;  %1131 = vmatpush.bf16.msrb.mxu3 %v2254_v8 }
 0x265   :  { %1093 = vmatpush.bf16.msrb.mxu0 %v2252_v59  ;;  %1106 = vmatpush.bf16.msra.mxu1 %v2258_v0 }
 0x266   :  { %1119 = vmatpush.bf16.msra.mxu2 %v2260_v1  ;;  %1132 = vmatpush.bf16.msrb.mxu3 %v2266_v23 }
 0x269   :  { %1094 = vmatpush.bf16.msrb.mxu0 %v2264_v7  ;;  %1107 = vmatpush.bf16.msra.mxu1 %v2270_v3 }
 0x26a   :  { %1120 = vmatpush.bf16.msra.mxu2 %v2272_v4  ;;  %1133 = vmatpush.bf16.msrb.mxu3 %v2278_v61 }
 0x26d   :  { %1095 = vmatpush.bf16.msrb.mxu0 %v2276_v9  ;;  %1108 = vmatpush.bf16.msra.mxu1 %v2282_v10 }
 0x26e   :  { %1121 = vmatpush.bf16.msra.mxu2 %v2284_v11  ;;  %1134 = vmatpush.bf16.msrb.mxu3 %v2290_v57 }
 0x271   :  { %1096 = vmatpush.bf16.msrb.mxu0 %v2288_v13  ;;  %1109 = vmatpush.bf16.msra.mxu1 %v2294_v14 }
 0x272   :  { %1122 = vmatpush.bf16.msra.mxu2 %v2296_v15  ;;  %1135 = vmatpush.bf16.msrb.mxu3 %v2302_v49 }
 0x275   :  { %1097 = vmatpush.bf16.msrb.mxu0 %v2300_v41  ;;  %1110 = vmatpush.bf16.msra.mxu1 %v2306_v37 }
 0x276   :  { %1123 = vmatpush.bf16.msra.mxu2 %v2308_v25  ;;  %1136 = vmatpush.bf16.msrb.mxu3 %v2316_v27 }
 0x2d4   :  { %v851_v39 = vpop.f32.mrf.mxu0  ;;  %v864_v5 = vpop.f32.mrf.mxu1 }
 0x2d5   :  { %v894_v60 = vadd.f32 %v851_v39, %v2136_v21  ;;  %v895_v29 = vadd.f32 %v864_v5, %v2157_v47 }
 0x2d7   :  { %v1696_v16 = vmul.f32 -1.442695, %v894_v60  ;;  %v1697_v42 = vmul.f32 -1.442695, %v895_v29 }
 0x2d9   :  { %1796 = vpow2.f32 %v1696_v16 }
 0x2da   :  { %1798 = vpow2.f32 %v1697_v42 }
 0x2db   :  { %v877_v56 = vpop.f32.mrf.mxu2  ;;  %v890_v24 = vpop.f32.mrf.mxu3 }
 0x2dc   :  { %v896_v53 = vadd.f32 %v877_v56, %v2635_v51  ;;  %v853_v17 = vpop.f32.mrf.mxu0  ;;  %v866_v33 = vpop.f32.mrf.mxu1  ;;  %v897_v36 = vadd.f32 %v890_v24, %v2636_v18 }
 0x2de   :  { %v1698_v63 = vmul.f32 -1.442695, %v896_v53 }
 0x2df   :  { %v1797_v45 = vpop.eup %1796 }
 0x2e0   :  { %v1799_v6 = vpop.eup %1798  ;;  %v907_v55 = vadd.f32 1.0, %v1797_v45  ;;  %1800 = vpow2.f32 %v1698_v63 }
 0x2e1   :  { %v908_v19 = vadd.f32 1.0, %v1799_v6 }
 0x2e2   :  { %1802 = vrcp.f32 %v907_v55  ;;  %v921_v58 = vand.u32 2147483648, %v907_v55  ;;  %v919_v5 = vand.u32 2147483647, %v907_v55  ;;  %vm915_vm7 = vweird.f32 %v907_v55 }
 0x2e3   :  { %1804 = vrcp.f32 %v908_v19  ;;  %v879_v21 = vpop.f32.mrf.mxu2  ;;  %v892_v47 = vpop.f32.mrf.mxu3  ;;  %v936_v26 = vand.u32 2147483648, %v908_v19  ;;  %v934_v29 = vand.u32 2147483647, %v908_v19  ;;  %vm930_vm8 = vweird.f32 %v908_v19 }
 0x2e4   :  { %v922_v24 = vor.u32 1.1754944e-38, %v921_v58  ;;  %vm920_vm11 = vcmp.eq.f32.partialorder %v919_v5, 8.507059e+37  ;;  %v2638_v5 = vld [vmem:[#allocation34_spill] sm:$0xff] }
 0x2e5   :  { %v937_v53 = vor.u32 1.1754944e-38, %v936_v26  ;;  %vm935_vm12 = vcmp.eq.f32.partialorder %v934_v29, 8.507059e+37  ;;  %v2637_v26 = vld [vmem:[#allocation31_spill] sm:$0xff] }
 0x2e6   :  { %v1801_v28 = vpop.eup %1800 }
 0x2e7   :  { %v909_v31 = vadd.f32 1.0, %v1801_v28 }
 0x2e8   :  { %v1803_v34 = vpop.eup %1802 }
 0x2e9   :  { %v1805_v20 = vpop.eup %1804  ;;  %v911_v22 = vmul.f32 %v1803_v34, %v907_v55  ;;  %1806 = vrcp.f32 %v909_v31  ;;  %vm916_vm5 = vweird.f32 %v1803_v34  ;;  %vm945_vm14 = vweird.f32 %v909_v31 }
 0x2ea   :  { %v926_v50 = vmul.f32 %v1805_v20, %v908_v19  ;;  %1808 = vtanh.f32 %v897_v36  ;;  %vm931_vm6 = vweird.f32 %v1805_v20  ;;  %vm917_vm9 = vmor %vm915_vm7, %vm916_vm5  ;;  %v951_v36 = vand.u32 2147483648, %v909_v31 }
 0x2eb   :  { %v912_v54 = vsub.f32 1.0, %v911_v22  ;;  %vm932_vm10 = vmor %vm930_vm8, %vm931_vm6 }
 0x2ec   :  { %v927_v12 = vsub.f32 1.0, %v926_v50  ;;  %v952_v50 = vor.u32 1.1754944e-38, %v951_v36 }
 0x2ed   :  { %v913_v39 = vmul.f32 %v1803_v34, %v912_v54 }
 0x2ee   :  { %v928_v60 = vmul.f32 %v1805_v20, %v927_v12 }
 0x2ef   :  { %v1807_v16 = vpop.eup %1806  ;;  %v914_v42 = vadd.f32 %v1803_v34, %v913_v39 }
 0x2f0   :  { %v941_v56 = vmul.f32 %v1807_v16, %v909_v31  ;;  %v929_v51 = vadd.f32 %v1805_v20, %v928_v60  ;;  %v1809_v33 = vpop.eup %1808  ;;  %vm946_vm13 = vweird.f32 %v1807_v16 }
 0x2f1   :  { %v918_v17 = vsel %vm917_vm9, %v1803_v34, %v914_v42  ;;  %v949_v34 = vand.u32 2147483647, %v909_v31  ;;  %vm947_vm15 = vmor %vm945_vm14, %vm946_vm13 }
 0x2f2   :  { %v942_v63 = vsub.f32 1.0, %v941_v56  ;;  %v923_v45 = vsel %vm920_vm11, %v922_v24, %v918_v17  ;;  %v933_v6 = vsel %vm932_vm10, %v1805_v20, %v929_v51  ;;  %v2639_v24 = vld [vmem:[#allocation37_spill] sm:$0xff] }
 0x2f3   :  { %v938_v21 = vsel %vm935_vm12, %v937_v53, %v933_v6  ;;  %v957_v47 = vmul.f32 %v1809_v33, %v923_v45  ;;  %vm950_vm0 = vcmp.eq.f32.partialorder %v949_v34, 8.507059e+37  ;;  %v2640_v34 = vld [vmem:[#allocation36_spill] sm:$0xff] }
 0x2f4   :  { %v956_v28 = vmul.f32 %v938_v21, %v2428_v38  ;;  %v943_v18 = vmul.f32 %v1807_v16, %v942_v63 }
 0x2f6   :  { %v2468_v55 = vadd.f32 %v957_v47, %v956_v28  ;;  %v944_v19 = vadd.f32 %v1807_v16, %v943_v18 }
 0x2f8   :  { %1810 = vtanh.f32 %v2468_v55  ;;  %v948_v22 = vsel %vm947_vm15, %v1807_v16, %v944_v19 }
 0x2f9   :  { %v953_v54 = vsel %vm950_vm0, %v952_v50, %v948_v22 }
 0x2fe   :  { %v1811_v20 = vpop.eup %1810 }
 0x2ff   :  { %v960_v12 = vmul.f32 %v1811_v20, %v953_v54 }
 0x301   :  { %v965_v58 = vpack.c.bf16 %v960_v12, %v960_v12 }
 0x303   :  { %974 = vmatmul.bf16.vlgmr.msra.gmra.mxu0 %v965_v58  ;;  %987 = vmatmul.bf16.vlgmr.msrb.gmra.mxu1 %v965_v58 }
 0x304   :  { %1000 = vmatmul.bf16.vlgmr.msrb.gmra.mxu2 %v965_v58  ;;  %1013 = vmatmul.bf16.vlgmr.msra.gmra.mxu3 %v965_v58 }
 0x305   :  { %1214 = vmatpush.bf16.msra.mxu0 %v2221_v48  ;;  %1227 = vmatpush.bf16.msrb.mxu1 %v2223_v35 }
 0x306   :  { %1240 = vmatpush.bf16.msrb.mxu2 %v2225_v62  ;;  %1253 = vmatpush.bf16.msra.mxu3 %v2236_v52 }
 0x309   :  { %1215 = vmatpush.bf16.msra.mxu0 %v2228_v46  ;;  %1228 = vmatpush.bf16.msrb.mxu1 %v2232_v32 }
 0x30a   :  { %1241 = vmatpush.bf16.msrb.mxu2 %v2234_v40  ;;  %1254 = vmatpush.bf16.msra.mxu3 %v2248_v44 }
 0x30d   :  { %1216 = vmatpush.bf16.msra.mxu0 %v2240_v2  ;;  %1229 = vmatpush.bf16.msrb.mxu1 %v2244_v30 }
 0x30e   :  { %1242 = vmatpush.bf16.msrb.mxu2 %v2246_v43  ;;  %1255 = vmatpush.bf16.msra.mxu3 %v2254_v8 }
 0x311   :  { %1217 = vmatpush.bf16.msra.mxu0 %v2252_v59  ;;  %1230 = vmatpush.bf16.msrb.mxu1 %v2258_v0 }
 0x312   :  { %1243 = vmatpush.bf16.msrb.mxu2 %v2260_v1  ;;  %1256 = vmatpush.bf16.msra.mxu3 %v2266_v23 }
 0x315   :  { %1218 = vmatpush.bf16.msra.mxu0 %v2264_v7  ;;  %1231 = vmatpush.bf16.msrb.mxu1 %v2270_v3 }
 0x316   :  { %1244 = vmatpush.bf16.msrb.mxu2 %v2272_v4  ;;  %1257 = vmatpush.bf16.msra.mxu3 %v2278_v61 }
 0x319   :  { %1219 = vmatpush.bf16.msra.mxu0 %v2276_v9  ;;  %1232 = vmatpush.bf16.msrb.mxu1 %v2282_v10 }
 0x31a   :  { %1245 = vmatpush.bf16.msrb.mxu2 %v2284_v11  ;;  %1258 = vmatpush.bf16.msra.mxu3 %v2290_v57 }
 0x31d   :  { %1220 = vmatpush.bf16.msra.mxu0 %v2288_v13  ;;  %1233 = vmatpush.bf16.msrb.mxu1 %v2294_v14 }
 0x31e   :  { %1246 = vmatpush.bf16.msrb.mxu2 %v2296_v15  ;;  %1259 = vmatpush.bf16.msra.mxu3 %v2302_v49 }
 0x321   :  { %1221 = vmatpush.bf16.msra.mxu0 %v2300_v41  ;;  %1234 = vmatpush.bf16.msrb.mxu1 %v2306_v37 }
 0x322   :  { %1247 = vmatpush.bf16.msrb.mxu2 %v2308_v25  ;;  %1260 = vmatpush.bf16.msra.mxu3 %v2316_v27 }
 0x380   :  { %v975_v38 = vpop.f32.mrf.mxu0  ;;  %v988_v31 = vpop.f32.mrf.mxu1 }
 0x381   :  { %v1018_v39 = vadd.f32 %v975_v38, %v2637_v26  ;;  %v1019_v60 = vadd.f32 %v988_v31, %v2638_v5 }
 0x383   :  { %v1699_v29 = vmul.f32 -1.442695, %v1018_v39  ;;  %v1700_v16 = vmul.f32 -1.442695, %v1019_v60 }
 0x385   :  { %1812 = vpow2.f32 %v1699_v29 }
 0x386   :  { %1814 = vpow2.f32 %v1700_v16 }
 0x387   :  { %v1001_v42 = vpop.f32.mrf.mxu2  ;;  %v1014_v56 = vpop.f32.mrf.mxu3 }
 0x388   :  { %v1020_v51 = vadd.f32 %v1001_v42, %v2639_v24  ;;  %v977_v53 = vpop.f32.mrf.mxu0  ;;  %v990_v17 = vpop.f32.mrf.mxu1  ;;  %v1021_v22 = vadd.f32 %v1014_v56, %v2640_v34 }
 0x38a   :  { %v1701_v33 = vmul.f32 -1.442695, %v1020_v51 }
 0x38b   :  { %v1813_v63 = vpop.eup %1812 }
 0x38c   :  { %v1815_v45 = vpop.eup %1814  ;;  %v1031_v6 = vadd.f32 1.0, %v1813_v63  ;;  %1816 = vpow2.f32 %v1701_v33 }
 0x38d   :  { %v1032_v21 = vadd.f32 1.0, %v1815_v45 }
 0x38e   :  { %1818 = vrcp.f32 %v1031_v6  ;;  %v1045_v38 = vand.u32 2147483648, %v1031_v6  ;;  %v1043_v39 = vand.u32 2147483647, %v1031_v6  ;;  %vm1039_vm3 = vweird.f32 %v1031_v6 }
 0x38f   :  { %1820 = vrcp.f32 %v1032_v21  ;;  %v1003_v47 = vpop.f32.mrf.mxu2  ;;  %v1016_v28 = vpop.f32.mrf.mxu3  ;;  %v1060_v31 = vand.u32 2147483648, %v1032_v21  ;;  %v1058_v60 = vand.u32 2147483647, %v1032_v21  ;;  %vm1054_vm4 = vweird.f32 %v1032_v21 }
 0x390   :  { %v1046_v56 = vor.u32 1.1754944e-38, %v1045_v38  ;;  %vm1044_vm7 = vcmp.eq.f32.partialorder %v1043_v39, 8.507059e+37 }
 0x391   :  { %v1061_v51 = vor.u32 1.1754944e-38, %v1060_v31  ;;  %vm1059_vm8 = vcmp.eq.f32.partialorder %v1058_v60, 8.507059e+37 }
 0x392   :  { %v1817_v18 = vpop.eup %1816 }
 0x393   :  { %v1033_v19 = vadd.f32 1.0, %v1817_v18 }
 0x394   :  { %v1819_v36 = vpop.eup %1818 }
 0x395   :  { %v1821_v50 = vpop.eup %1820  ;;  %v1035_v20 = vmul.f32 %v1819_v36, %v1031_v6  ;;  %1822 = vrcp.f32 %v1033_v19  ;;  %vm1040_vm1 = vweird.f32 %v1819_v36  ;;  %vm1069_vm10 = vweird.f32 %v1033_v19 }
 0x396   :  { %v1050_v54 = vmul.f32 %v1821_v50, %v1032_v21  ;;  %1824 = vtanh.f32 %v1021_v22  ;;  %vm1055_vm2 = vweird.f32 %v1821_v50  ;;  %vm1041_vm5 = vmor %vm1039_vm3, %vm1040_vm1  ;;  %v1075_v22 = vand.u32 2147483648, %v1033_v19 }
 0x397   :  { %v1036_v12 = vsub.f32 1.0, %v1035_v20  ;;  %vm1056_vm6 = vmor %vm1054_vm4, %vm1055_vm2 }
 0x398   :  { %v1051_v58 = vsub.f32 1.0, %v1050_v54  ;;  %v1076_v54 = vor.u32 1.1754944e-38, %v1075_v22 }
 0x399   :  { %v1037_v26 = vmul.f32 %v1819_v36, %v1036_v12 }
 0x39a   :  { %v1052_v5 = vmul.f32 %v1821_v50, %v1051_v58 }
 0x39b   :  { %v1823_v29 = vpop.eup %1822  ;;  %v1038_v16 = vadd.f32 %v1819_v36, %v1037_v26 }
 0x39c   :  { %v1065_v42 = vmul.f32 %v1823_v29, %v1033_v19  ;;  %v1053_v24 = vadd.f32 %v1821_v50, %v1052_v5  ;;  %v1825_v17 = vpop.eup %1824  ;;  %vm1070_vm9 = vweird.f32 %v1823_v29 }
 0x39d   :  { %v1042_v53 = vsel %vm1041_vm5, %v1819_v36, %v1038_v16  ;;  %v1073_v36 = vand.u32 2147483647, %v1033_v19  ;;  %vm1071_vm11 = vmor %vm1069_vm10, %vm1070_vm9 }
 0x39e   :  { %v1066_v33 = vsub.f32 1.0, %v1065_v42  ;;  %v1047_v63 = vsel %vm1044_vm7, %v1046_v56, %v1042_v53  ;;  %v1057_v45 = vsel %vm1056_vm6, %v1821_v50, %v1053_v24 }
 0x39f   :  { %v1062_v47 = vsel %vm1059_vm8, %v1061_v51, %v1057_v45  ;;  %v1081_v28 = vmul.f32 %v1825_v17, %v1047_v63  ;;  %vm1074_vm12 = vcmp.eq.f32.partialorder %v1073_v36, 8.507059e+37 }
 0x3a0   :  { %v1080_v18 = vmul.f32 %v1062_v47, %v2468_v55  ;;  %v1067_v34 = vmul.f32 %v1823_v29, %v1066_v33 }
 0x3a2   :  { %v2508_v6 = vadd.f32 %v1081_v28, %v1080_v18  ;;  %v1068_v21 = vadd.f32 %v1823_v29, %v1067_v34 }
 0x3a4   :  { %1826 = vtanh.f32 %v2508_v6  ;;  %v1072_v20 = vsel %vm1071_vm11, %v1823_v29, %v1068_v21 }
 0x3a5   :  { %v1077_v12 = vsel %vm1074_vm12, %v1076_v54, %v1072_v20 }
 0x3aa   :  { %v1827_v50 = vpop.eup %1826 }
 0x3ab   :  { %v1084_v58 = vmul.f32 %v1827_v50, %v1077_v12 }
 0x3ad   :  { %v1089_v38 = vpack.c.bf16 %v1084_v58, %v1084_v58 }
 0x3af   :  { %1098 = vmatmul.bf16.vlgmr.msrb.gmra.mxu0 %v1089_v38  ;;  %1111 = vmatmul.bf16.vlgmr.msra.gmra.mxu1 %v1089_v38 }
 0x3b0   :  { %1124 = vmatmul.bf16.vlgmr.msra.gmra.mxu2 %v1089_v38  ;;  %1137 = vmatmul.bf16.vlgmr.msrb.gmra.mxu3 %v1089_v38 }
 0x3b1   :  { %1338 = vmatpush.bf16.msrb.mxu0 %v2221_v48  ;;  %1351 = vmatpush.bf16.msra.mxu1 %v2223_v35  ;;  %v2641_v48 = vld [vmem:[#allocation35_spill] sm:$0xff] }
 0x3b2   :  { %1364 = vmatpush.bf16.msra.mxu2 %v2225_v62  ;;  %1377 = vmatpush.bf16.msrb.mxu3 %v2236_v52  ;;  %v2642_v62 = vld [vmem:[#allocation38_spill] sm:$0xff] }
 0x3b5   :  { %1339 = vmatpush.bf16.msrb.mxu0 %v2228_v46  ;;  %1352 = vmatpush.bf16.msra.mxu1 %v2232_v32 }
 0x3b6   :  { %1365 = vmatpush.bf16.msra.mxu2 %v2234_v40  ;;  %1378 = vmatpush.bf16.msrb.mxu3 %v2248_v44 }
 0x3b9   :  { %1340 = vmatpush.bf16.msrb.mxu0 %v2240_v2  ;;  %1353 = vmatpush.bf16.msra.mxu1 %v2244_v30 }
 0x3ba   :  { %1366 = vmatpush.bf16.msra.mxu2 %v2246_v43  ;;  %1379 = vmatpush.bf16.msrb.mxu3 %v2254_v8  ;;  %v2643_v43 = vld [vmem:[#allocation40_spill] sm:$0xff] }
 0x3bd   :  { %1341 = vmatpush.bf16.msrb.mxu0 %v2252_v59  ;;  %1354 = vmatpush.bf16.msra.mxu1 %v2258_v0 }
 0x3be   :  { %1367 = vmatpush.bf16.msra.mxu2 %v2260_v1  ;;  %1380 = vmatpush.bf16.msrb.mxu3 %v2266_v23 }
 0x3c1   :  { %1342 = vmatpush.bf16.msrb.mxu0 %v2264_v7  ;;  %1355 = vmatpush.bf16.msra.mxu1 %v2270_v3 }
 0x3c2   :  { %1368 = vmatpush.bf16.msra.mxu2 %v2272_v4  ;;  %1381 = vmatpush.bf16.msrb.mxu3 %v2278_v61 }
 0x3c5   :  { %1343 = vmatpush.bf16.msrb.mxu0 %v2276_v9  ;;  %1356 = vmatpush.bf16.msra.mxu1 %v2282_v10 }
 0x3c6   :  { %1369 = vmatpush.bf16.msra.mxu2 %v2284_v11  ;;  %1382 = vmatpush.bf16.msrb.mxu3 %v2290_v57  ;;  %v2644_v57 = vld [vmem:[#allocation39_spill] sm:$0xff] }
 0x3c9   :  { %1344 = vmatpush.bf16.msrb.mxu0 %v2288_v13  ;;  %1357 = vmatpush.bf16.msra.mxu1 %v2294_v14 }
 0x3ca   :  { %1370 = vmatpush.bf16.msra.mxu2 %v2296_v15  ;;  %1383 = vmatpush.bf16.msrb.mxu3 %v2302_v49 }
 0x3cd   :  { %1345 = vmatpush.bf16.msrb.mxu0 %v2300_v41  ;;  %1358 = vmatpush.bf16.msra.mxu1 %v2306_v37 }
 0x3ce   :  { %1371 = vmatpush.bf16.msra.mxu2 %v2308_v25  ;;  %1384 = vmatpush.bf16.msrb.mxu3 %v2316_v27 }
 0x42c   :  { %v1099_v2 = vpop.f32.mrf.mxu0  ;;  %v1112_v8 = vpop.f32.mrf.mxu1 }
 0x42d   :  { %v1142_v35 = vadd.f32 %v1099_v2, %v2641_v48  ;;  %v1143_v46 = vadd.f32 %v1112_v8, %v2642_v62  ;;  %v2645_v2 = vld [vmem:[#allocation29_spill] sm:$0xff] }
 0x42e   :  { %v2646_v48 = vld [vmem:[#allocation41_spill] sm:$0xff] }
 0x42f   :  { %v1702_v32 = vmul.f32 -1.442695, %v1142_v35  ;;  %v1703_v40 = vmul.f32 -1.442695, %v1143_v46 }
 0x431   :  { %1828 = vpow2.f32 %v1702_v32 }
 0x432   :  { %1830 = vpow2.f32 %v1703_v40 }
 0x433   :  { %v1125_v52 = vpop.f32.mrf.mxu2  ;;  %v1138_v30 = vpop.f32.mrf.mxu3 }
 0x434   :  { %v1144_v44 = vadd.f32 %v1125_v52, %v2643_v43  ;;  %v1101_v59 = vpop.f32.mrf.mxu0  ;;  %v1114_v0 = vpop.f32.mrf.mxu1  ;;  %v1145_v14 = vadd.f32 %v1138_v30, %v2644_v57  ;;  %v2647_v52 = vld [vmem:[#allocation43_spill] sm:$0xff] }
 0x436   :  { %v1704_v1 = vmul.f32 -1.442695, %v1144_v44 }
 0x437   :  { %v1829_v7 = vpop.eup %1828 }
 0x438   :  { %v1831_v23 = vpop.eup %1830  ;;  %v1155_v3 = vadd.f32 1.0, %v1829_v7  ;;  %1832 = vpow2.f32 %v1704_v1 }
 0x439   :  { %v1156_v4 = vadd.f32 1.0, %v1831_v23 }
 0x43a   :  { %1834 = vrcp.f32 %v1155_v3  ;;  %v1169_v27 = vand.u32 2147483648, %v1155_v3  ;;  %v1167_v31 = vand.u32 2147483647, %v1155_v3  ;;  %vm1163_vm15 = vweird.f32 %v1155_v3 }
 0x43b   :  { %1836 = vrcp.f32 %v1156_v4  ;;  %v1127_v9 = vpop.f32.mrf.mxu2  ;;  %v1140_v61 = vpop.f32.mrf.mxu3  ;;  %v1184_v55 = vand.u32 2147483648, %v1156_v4  ;;  %v1182_v39 = vand.u32 2147483647, %v1156_v4  ;;  %vm1178_vm0 = vweird.f32 %v1156_v4 }
 0x43c   :  { %v1170_v16 = vor.u32 1.1754944e-38, %v1169_v27  ;;  %vm1168_vm3 = vcmp.eq.f32.partialorder %v1167_v31, 8.507059e+37 }
 0x43d   :  { %v1185_v56 = vor.u32 1.1754944e-38, %v1184_v55  ;;  %vm1183_vm4 = vcmp.eq.f32.partialorder %v1182_v39, 8.507059e+37 }
 0x43e   :  { %v1833_v10 = vpop.eup %1832 }
 0x43f   :  { %v1157_v11 = vadd.f32 1.0, %v1833_v10 }
 0x440   :  { %v1835_v13 = vpop.eup %1834 }
 0x441   :  { %v1837_v15 = vpop.eup %1836  ;;  %v1159_v41 = vmul.f32 %v1835_v13, %v1155_v3  ;;  %1838 = vrcp.f32 %v1157_v11  ;;  %vm1164_vm13 = vweird.f32 %v1835_v13  ;;  %v1199_v21 = vand.u32 2147483648, %v1157_v11 }
 0x442   :  { %v1174_v49 = vmul.f32 %v1837_v15, %v1156_v4  ;;  %1840 = vtanh.f32 %v1145_v14  ;;  %vm1179_vm14 = vweird.f32 %v1837_v15  ;;  %vm1165_vm1 = vmor %vm1163_vm15, %vm1164_vm13  ;;  %vm1193_vm6 = vweird.f32 %v1157_v11 }
 0x443   :  { %v1160_v37 = vsub.f32 1.0, %v1159_v41  ;;  %vm1180_vm2 = vmor %vm1178_vm0, %vm1179_vm14  ;;  %v1197_v22 = vand.u32 2147483647, %v1157_v11  ;;  %v1200_v20 = vor.u32 1.1754944e-38, %v1199_v21 }
 0x444   :  { %v1175_v25 = vsub.f32 1.0, %v1174_v49 }
 0x445   :  { %v1161_v19 = vmul.f32 %v1835_v13, %v1160_v37  ;;  %vm1198_vm8 = vcmp.eq.f32.partialorder %v1197_v22, 8.507059e+37 }
 0x446   :  { %v1176_v26 = vmul.f32 %v1837_v15, %v1175_v25 }
 0x447   :  { %v1839_v5 = vpop.eup %1838  ;;  %v1162_v60 = vadd.f32 %v1835_v13, %v1161_v19 }
 0x448   :  { %v1189_v29 = vmul.f32 %v1839_v5, %v1157_v11  ;;  %v1177_v42 = vadd.f32 %v1837_v15, %v1176_v26  ;;  %v1841_v51 = vpop.eup %1840  ;;  %vm1194_vm5 = vweird.f32 %v1839_v5  ;;  %v2648_v11 = vld [vmem:[#allocation42_spill] sm:$0xff] }
 0x449   :  { %v1166_v24 = vsel %vm1165_vm1, %v1835_v13, %v1162_v60  ;;  %vm1195_vm7 = vmor %vm1193_vm6, %vm1194_vm5 }
 0x44a   :  { %v1190_v53 = vsub.f32 1.0, %v1189_v29  ;;  %v1171_v17 = vsel %vm1168_vm3, %v1170_v16, %v1166_v24  ;;  %v1181_v33 = vsel %vm1180_vm2, %v1837_v15, %v1177_v42 }
 0x44b   :  { %v1186_v63 = vsel %vm1183_vm4, %v1185_v56, %v1181_v33  ;;  %v1205_v45 = vmul.f32 %v1841_v51, %v1171_v17 }
 0x44c   :  { %v1204_v47 = vmul.f32 %v1186_v63, %v2508_v6  ;;  %v1191_v28 = vmul.f32 %v1839_v5, %v1190_v53 }
 0x44e   :  { %v2548_v18 = vadd.f32 %v1205_v45, %v1204_v47  ;;  %v1192_v34 = vadd.f32 %v1839_v5, %v1191_v28 }
 0x450   :  { %1842 = vtanh.f32 %v2548_v18  ;;  %v1196_v36 = vsel %vm1195_vm7, %v1839_v5, %v1192_v34 }
 0x451   :  { %v1201_v50 = vsel %vm1198_vm8, %v1200_v20, %v1196_v36 }
 0x456   :  { %v1843_v54 = vpop.eup %1842 }
 0x457   :  { %v1208_v12 = vmul.f32 %v1843_v54, %v1201_v50 }
 0x459   :  { %v1213_v58 = vpack.c.bf16 %v1208_v12, %v1208_v12 }
 0x45b   :  { %1222 = vmatmul.bf16.vlgmr.msra.gmra.mxu0 %v1213_v58  ;;  %1235 = vmatmul.bf16.vlgmr.msrb.gmra.mxu1 %v1213_v58 }
 0x45c   :  { %1248 = vmatmul.bf16.vlgmr.msrb.gmra.mxu2 %v1213_v58  ;;  %1261 = vmatmul.bf16.vlgmr.msra.gmra.mxu3 %v1213_v58 }
 0x4d8   :  { %v1223_v6 = vpop.f32.mrf.mxu0  ;;  %v1236_v38 = vpop.f32.mrf.mxu1 }
 0x4d9   :  { %v1266_v8 = vadd.f32 %v1223_v6, %v2645_v2  ;;  %v1267_v35 = vadd.f32 %v1236_v38, %v2646_v48  ;;  %v2649_v6 = vld [vmem:[#allocation30_spill] sm:$0xff]  ;;  %v2650_v2 = vld [vmem:[#allocation44_spill] sm:$0xff] }
 0x4db   :  { %v1705_v62 = vmul.f32 -1.442695, %v1266_v8  ;;  %v1706_v46 = vmul.f32 -1.442695, %v1267_v35 }
 0x4dd   :  { %1844 = vpow2.f32 %v1705_v62 }
 0x4de   :  { %1846 = vpow2.f32 %v1706_v46 }
 0x4df   :  { %v1249_v32 = vpop.f32.mrf.mxu2  ;;  %v1262_v40 = vpop.f32.mrf.mxu3 }
 0x4e0   :  { %v1268_v30 = vadd.f32 %v1249_v32, %v2647_v52  ;;  %v1225_v43 = vpop.f32.mrf.mxu0  ;;  %v1238_v44 = vpop.f32.mrf.mxu1  ;;  %v1269_v13 = vadd.f32 %v1262_v40, %v2648_v11  ;;  %v2651_v32 = vld [vmem:[#allocation46_spill] sm:$0xff] }
 0x4e2   :  { %v1707_v59 = vmul.f32 -1.442695, %v1268_v30 }
 0x4e3   :  { %v1845_v0 = vpop.eup %1844 }
 0x4e4   :  { %v1847_v1 = vpop.eup %1846  ;;  %v1279_v7 = vadd.f32 1.0, %v1845_v0  ;;  %1848 = vpow2.f32 %v1707_v59 }
 0x4e5   :  { %v1280_v23 = vadd.f32 1.0, %v1847_v1 }
 0x4e6   :  { %1850 = vrcp.f32 %v1279_v7  ;;  %v1293_v37 = vand.u32 2147483648, %v1279_v7  ;;  %v1291_v55 = vand.u32 2147483647, %v1279_v7  ;;  %vm1287_vm11 = vweird.f32 %v1279_v7 }
 0x4e7   :  { %1852 = vrcp.f32 %v1280_v23  ;;  %v1251_v3 = vpop.f32.mrf.mxu2  ;;  %v1264_v4 = vpop.f32.mrf.mxu3  ;;  %v1308_v25 = vand.u32 2147483648, %v1280_v23  ;;  %v1306_v31 = vand.u32 2147483647, %v1280_v23  ;;  %vm1302_vm12 = vweird.f32 %v1280_v23 }
 0x4e8   :  { %v1294_v60 = vor.u32 1.1754944e-38, %v1293_v37  ;;  %vm1292_vm15 = vcmp.eq.f32.partialorder %v1291_v55, 8.507059e+37 }
 0x4e9   :  { %v1309_v16 = vor.u32 1.1754944e-38, %v1308_v25  ;;  %vm1307_vm0 = vcmp.eq.f32.partialorder %v1306_v31, 8.507059e+37 }
 0x4ea   :  { %v1849_v9 = vpop.eup %1848 }
 0x4eb   :  { %v1281_v61 = vadd.f32 1.0, %v1849_v9 }
 0x4ec   :  { %v1851_v10 = vpop.eup %1850 }
 0x4ed   :  { %v1853_v57 = vpop.eup %1852  ;;  %v1283_v14 = vmul.f32 %v1851_v10, %v1279_v7  ;;  %1854 = vrcp.f32 %v1281_v61  ;;  %vm1288_vm9 = vweird.f32 %v1851_v10  ;;  %v1323_v34 = vand.u32 2147483648, %v1281_v61 }
 0x4ee   :  { %v1298_v15 = vmul.f32 %v1853_v57, %v1280_v23  ;;  %1856 = vtanh.f32 %v1269_v13  ;;  %vm1303_vm10 = vweird.f32 %v1853_v57  ;;  %vm1289_vm13 = vmor %vm1287_vm11, %vm1288_vm9  ;;  %vm1317_vm2 = vweird.f32 %v1281_v61 }
 0x4ef   :  { %v1284_v41 = vsub.f32 1.0, %v1283_v14  ;;  %vm1304_vm14 = vmor %vm1302_vm12, %vm1303_vm10  ;;  %v1321_v21 = vand.u32 2147483647, %v1281_v61  ;;  %v1324_v36 = vor.u32 1.1754944e-38, %v1323_v34 }
 0x4f0   :  { %v1299_v49 = vsub.f32 1.0, %v1298_v15 }
 0x4f1   :  { %v1285_v27 = vmul.f32 %v1851_v10, %v1284_v41  ;;  %vm1322_vm4 = vcmp.eq.f32.partialorder %v1321_v21, 8.507059e+37 }
 0x4f2   :  { %v1300_v19 = vmul.f32 %v1853_v57, %v1299_v49 }
 0x4f3   :  { %v1855_v26 = vpop.eup %1854  ;;  %v1286_v39 = vadd.f32 %v1851_v10, %v1285_v27 }
 0x4f4   :  { %v1313_v5 = vmul.f32 %v1855_v26, %v1281_v61  ;;  %v1301_v29 = vadd.f32 %v1853_v57, %v1300_v19  ;;  %v1857_v56 = vpop.eup %1856  ;;  %vm1318_vm1 = vweird.f32 %v1855_v26  ;;  %v2652_v61 = vld [vmem:[#allocation45_spill] sm:$0xff] }
 0x4f5   :  { %v1290_v42 = vsel %vm1289_vm13, %v1851_v10, %v1286_v39  ;;  %vm1319_vm3 = vmor %vm1317_vm2, %vm1318_vm1 }
 0x4f6   :  { %v1314_v24 = vsub.f32 1.0, %v1313_v5  ;;  %v1295_v51 = vsel %vm1292_vm15, %v1294_v60, %v1290_v42  ;;  %v1305_v53 = vsel %vm1304_vm14, %v1853_v57, %v1301_v29 }
 0x4f7   :  { %v1310_v17 = vsel %vm1307_vm0, %v1309_v16, %v1305_v53  ;;  %v1329_v33 = vmul.f32 %v1857_v56, %v1295_v51 }
 0x4f8   :  { %v1328_v63 = vmul.f32 %v1310_v17, %v2548_v18  ;;  %v1315_v45 = vmul.f32 %v1855_v26, %v1314_v24 }
 0x4fa   :  { %v2556_v47 = vadd.f32 %v1329_v33, %v1328_v63  ;;  %v1316_v28 = vadd.f32 %v1855_v26, %v1315_v45 }
 0x4fc   :  { %1858 = vtanh.f32 %v2556_v47  ;;  %v1320_v22 = vsel %vm1319_vm3, %v1855_v26, %v1316_v28 }
 0x4fd   :  { %v1325_v54 = vsel %vm1322_vm4, %v1324_v36, %v1320_v22 }
 0x502   :  { %v1859_v20 = vpop.eup %1858 }
 0x503   :  { %v1332_v50 = vmul.f32 %v1859_v20, %v1325_v54 }
 0x505   :  { %v1337_v12 = vpack.c.bf16 %v1332_v50, %v1332_v50  ;;  %v2653_v50 = vld [vmem:[#allocation28_spill] sm:$0xff] }
 0x506   :  { %1481 = vmatpush.msra.mxu0 %v2653_v50 }
 0x507   :  { %1346 = vmatmul.bf16.vlgmr.msrb.gmra.mxu0 %v1337_v12  ;;  %1359 = vmatmul.bf16.vlgmr.msra.gmra.mxu1 %v1337_v12 }
 0x508   :  { %1372 = vmatmul.bf16.vlgmr.msra.gmra.mxu2 %v1337_v12  ;;  %1385 = vmatmul.bf16.vlgmr.msrb.gmra.mxu3 %v1337_v12 }
 0x584   :  { %v1347_v18 = vpop.f32.mrf.mxu0  ;;  %v1360_v58 = vpop.f32.mrf.mxu1 }
 0x585   :  { %v1390_v38 = vadd.f32 %v1347_v18, %v2649_v6  ;;  %v1391_v8 = vadd.f32 %v1360_v58, %v2650_v2 }
 0x587   :  { %v1708_v48 = vmul.f32 -1.442695, %v1390_v38  ;;  %v1709_v35 = vmul.f32 -1.442695, %v1391_v8 }
 0x589   :  { %1860 = vpow2.f32 %v1708_v48 }
 0x58a   :  { %1862 = vpow2.f32 %v1709_v35 }
 0x58b   :  { %v1373_v62 = vpop.f32.mrf.mxu2  ;;  %v1386_v46 = vpop.f32.mrf.mxu3 }
 0x58c   :  { %v1392_v40 = vadd.f32 %v1373_v62, %v2651_v32  ;;  %v1349_v52 = vpop.f32.mrf.mxu0  ;;  %v1362_v30 = vpop.f32.mrf.mxu1  ;;  %v1393_v10 = vadd.f32 %v1386_v46, %v2652_v61 }
 0x58e   :  { %v1710_v43 = vmul.f32 -1.442695, %v1392_v40 }
 0x58f   :  { %v1861_v44 = vpop.eup %1860 }
 0x590   :  { %v1863_v59 = vpop.eup %1862  ;;  %v1403_v0 = vadd.f32 1.0, %v1861_v44  ;;  %1864 = vpow2.f32 %v1710_v43 }
 0x591   :  { %v1404_v1 = vadd.f32 1.0, %v1863_v59 }
 0x592   :  { %1866 = vrcp.f32 %v1403_v0  ;;  %v1417_v41 = vand.u32 2147483648, %v1403_v0  ;;  %v1415_v25 = vand.u32 2147483647, %v1403_v0  ;;  %vm1411_vm7 = vweird.f32 %v1403_v0 }
 0x593   :  { %1868 = vrcp.f32 %v1404_v1  ;;  %v1375_v7 = vpop.f32.mrf.mxu2  ;;  %v1388_v23 = vpop.f32.mrf.mxu3  ;;  %v1432_v49 = vand.u32 2147483648, %v1404_v1  ;;  %v1430_v55 = vand.u32 2147483647, %v1404_v1  ;;  %vm1426_vm8 = vweird.f32 %v1404_v1 }
 0x594   :  { %v1418_v39 = vor.u32 1.1754944e-38, %v1417_v41  ;;  %vm1416_vm11 = vcmp.eq.f32.partialorder %v1415_v25, 8.507059e+37 }
 0x595   :  { %v1433_v60 = vor.u32 1.1754944e-38, %v1432_v49  ;;  %vm1431_vm12 = vcmp.eq.f32.partialorder %v1430_v55, 8.507059e+37 }
 0x596   :  { %v1865_v3 = vpop.eup %1864 }
 0x597   :  { %v1405_v4 = vadd.f32 1.0, %v1865_v3 }
 0x598   :  { %v1867_v9 = vpop.eup %1866 }
 0x599   :  { %v1869_v11 = vpop.eup %1868  ;;  %v1407_v13 = vmul.f32 %v1867_v9, %v1403_v0  ;;  %1870 = vrcp.f32 %v1405_v4  ;;  %vm1412_vm5 = vweird.f32 %v1867_v9  ;;  %v1447_v28 = vand.u32 2147483648, %v1405_v4 }
 0x59a   :  { %v1422_v57 = vmul.f32 %v1869_v11, %v1404_v1  ;;  %1872 = vtanh.f32 %v1393_v10  ;;  %vm1427_vm6 = vweird.f32 %v1869_v11  ;;  %vm1413_vm9 = vmor %vm1411_vm7, %vm1412_vm5  ;;  %vm1441_vm14 = vweird.f32 %v1405_v4 }
 0x59b   :  { %v1408_v14 = vsub.f32 1.0, %v1407_v13  ;;  %vm1428_vm10 = vmor %vm1426_vm8, %vm1427_vm6  ;;  %v1445_v34 = vand.u32 2147483647, %v1405_v4  ;;  %v1448_v22 = vor.u32 1.1754944e-38, %v1447_v28 }
 0x59c   :  { %v1423_v15 = vsub.f32 1.0, %v1422_v57 }
 0x59d   :  { %v1409_v37 = vmul.f32 %v1867_v9, %v1408_v14  ;;  %vm1446_vm0 = vcmp.eq.f32.partialorder %v1445_v34, 8.507059e+37 }
 0x59e   :  { %v1424_v27 = vmul.f32 %v1869_v11, %v1423_v15 }
 0x59f   :  { %v1871_v19 = vpop.eup %1870  ;;  %v1410_v31 = vadd.f32 %v1867_v9, %v1409_v37 }
 0x5a0   :  { %v1437_v26 = vmul.f32 %v1871_v19, %v1405_v4  ;;  %v1425_v5 = vadd.f32 %v1869_v11, %v1424_v27  ;;  %v1873_v16 = vpop.eup %1872  ;;  %vm1442_vm13 = vweird.f32 %v1871_v19 }
 0x5a1   :  { %v1414_v29 = vsel %vm1413_vm9, %v1867_v9, %v1410_v31  ;;  %vm1443_vm15 = vmor %vm1441_vm14, %vm1442_vm13 }
 0x5a2   :  { %v1438_v42 = vsub.f32 1.0, %v1437_v26  ;;  %v1419_v56 = vsel %vm1416_vm11, %v1418_v39, %v1414_v29  ;;  %v1429_v24 = vsel %vm1428_vm10, %v1869_v11, %v1425_v5 }
 0x5a3   :  { %v1434_v51 = vsel %vm1431_vm12, %v1433_v60, %v1429_v24  ;;  %v1453_v53 = vmul.f32 %v1873_v16, %v1419_v56 }
 0x5a4   :  { %v1439_v17 = vmul.f32 %v1871_v19, %v1438_v42  ;;  %v1452_v33 = vmul.f32 %v1434_v51, %v2556_v47 }
 0x5a6   :  { %v1454_v63 = vadd.f32 %v1453_v53, %v1452_v33  ;;  %v1440_v45 = vadd.f32 %v1871_v19, %v1439_v17 }
 0x5a8   :  { %1874 = vtanh.f32 %v1454_v63  ;;  %v1444_v21 = vsel %vm1443_vm15, %v1871_v19, %v1440_v45 }
 0x5a9   :  { %v1449_v20 = vsel %vm1446_vm0, %v1448_v22, %v1444_v21 }
 0x5ae   :  { %v1875_v36 = vpop.eup %1874 }
 0x5af   :  { %v1456_v54 = vmul.f32 %v1875_v36, %v1449_v20 }
 0x5b1   :  { %1457 = vst [vmem:[%s2596_s7] sm:$0xff] %v1456_v54 }
 0x5b2   :  { %1903 = dma.done.wait [#allocation5 + $0x1], 2048 }
 0x5b3   :  { %1904 = vsyncadd [#allocation5 + $0x1], 4294965248  ;;  %v2654_v47 = vld [vmem:[#allocation27_spill] sm:$0xff]  ;;  %v2655_v12 = vld [vmem:[#allocation26_spill] sm:$0xff] }
 0x5b4   :  { %1482 = vmatpush.msra.mxu0 %v2654_v47  ;;  %v2656_v18 = vld [vmem:[#allocation25_spill] sm:$0xff]  ;;  %v2657_v58 = vld [vmem:[#allocation24_spill] sm:$0xff]  ;;  %v2658_v6 = vld [vmem:[#allocation23_spill] sm:$0xff] }
 0x5b5   :  { %v2659_v38 = vld [vmem:[#allocation22_spill] sm:$0xff]  ;;  %v2660_v2 = vld [vmem:[#allocation21_spill] sm:$0xff]  ;;  %v2661_v8 = vld [vmem:[#allocation20_spill] sm:$0xff] }
 0x5b6   :  { %1483 = vmatpush.msra.mxu0 %v2655_v12  ;;  %v2662_v48 = vld [vmem:[#allocation19_spill] sm:$0xff]  ;;  %v2663_v35 = vld [vmem:[#allocation18_spill] sm:$0xff]  ;;  %v2664_v62 = vld [vmem:[#allocation17_spill] sm:$0xff] }
 0x5b7   :  { %v2665_v46 = vld [vmem:[#allocation16_spill] sm:$0xff]  ;;  %v2666_v32 = vld [vmem:[#allocation15_spill] sm:$0xff]  ;;  %v2667_v40 = vld [vmem:[#allocation14_spill] sm:$0xff] }
 0x5b8   :  { %1484 = vmatpush.msra.mxu0 %v2656_v18  ;;  %v2668_v52 = vld [vmem:[#allocation13_spill] sm:$0xff] }
 0x5b9   :  { %v1876_v30 = vld [vmem:[%s2594_s5] ss:$0 sm:$0xff] }
 0x5ba   :  { %1485 = vmatpush.msra.mxu0 %v2657_v58 }
 0x5bc   :  { %1486 = vmatpush.msra.mxu0 %v2658_v6 }
 0x5be   :  { %1487 = vmatpush.msra.mxu0 %v2659_v38 }
 0x5c0   :  { %1488 = vmatpush.msra.mxu0 %v2660_v2 }
 0x5c2   :  { %1489 = vmatpush.msra.mxu0 %v2661_v8 }
 0x5c4   :  { %1490 = vmatpush.msra.mxu0 %v2662_v48 }
 0x5c6   :  { %1491 = vmatpush.msra.mxu0 %v2663_v35 }
 0x5c8   :  { %1492 = vmatpush.msra.mxu0 %v2664_v62 }
 0x5ca   :  { %1493 = vmatpush.msra.mxu0 %v2665_v46 }
 0x5cc   :  { %1494 = vmatpush.msra.mxu0 %v2666_v32 }
 0x5ce   :  { %1495 = vmatpush.msra.mxu0 %v2667_v40 }
 0x5d0   :  { %1496 = vmatpush.msra.mxu0 %v2668_v52 }
 0x5d1   :  { %1497 = vmatmul.f32.vlgmr.msra.gmra.mxu0 %v1456_v54 }
 0x64e   :  { %v1498_v43 = vpop.f32.mrf.mxu0 }
 0x64f   :  { %v1499_v44 = vadd.f32 %v1876_v30, %v1498_v43 }
 0x651   :  { %1501 = vst [vmem:[%s2595_s6] sm:$0xff] %v1499_v44 }
 0x652   :  { %1510 = vsyncmov [#allocation5] }
 0x655   :  { %s1511_s16 = vpop.sfrf %1510 }
 0x656   :  { %p1711_p0 = scmp.ne.s32.totalorder %s1511_s16, 0 }
 0x658   :  { %1515 = shalt.err (%p1711_p0)  }
 0x659   :  { %1517 = vsyncmov [#allocation5 + $0x1] }
 0x65c   :  { %s1518_s17 = vpop.sfrf %1517 }
 0x65d   :  { %p1712_p1 = scmp.ne.s32.totalorder %s1518_s17, 0 }
 0x65f   :  { %1522 = shalt.err (%p1712_p1)  }

</bundles_post_ra>
